<compile_context>
chip_gen: v7x
topology: tpu7x:2x2x1
jax: 0.10.0
libtpu: 0.0.40
codegen_flags: <defaults>
</compile_context>

<pallas_src>
import jax
import jax.numpy as jnp
from jax.experimental import pallas as pl
from jax.experimental.pallas import tpu as pltpu

NUM_CLASSES = 256
_LANE = 128      # lane width (last-dim tiling granule)
_SUBLANE = 8     # sublane granule (second-to-last dim)


def one_hot_kernel(x_ref, o_ref):
    # x_ref: (TB, TN) int32 in VMEM ; o_ref: (TB, TN, 256) float32 in VMEM
    x = x_ref[...]
    # inputs[inputs > 255] = 0   (clamp overflow to class 0; free VPU op)
    x = jnp.where(x > NUM_CLASSES - 1, 0, x)
    # One-hot via compare against a tiny broadcast class iota (no full-tile
    # int32 iota materialized).
    classes = jax.lax.broadcasted_iota(jnp.int32, (1, 1, NUM_CLASSES), 2)
    o_ref[...] = (x[:, :, None] == classes).astype(jnp.float32)


def _per_out_buffer_target_bytes():
    """Per-generation per-output-buffer VMEM target (~12-14 MiB)."""
    try:
        phys = int(pltpu.get_tpu_info().vmem_capacity_bytes)
    except Exception:
        phys = 64 << 20  # conservative (v7x physical VMEM)
    # 2 output buffers + 2 (tiny) input buffers + headroom stays well under
    # physical VMEM on every generation.
    return max(2 << 20, min(14 << 20, phys // 5))


def _largest_divisor_tile(total, max_tile, step):
    """Largest multiple of `step` that is <= max_tile and divides `total`."""
    t = min(max_tile, total)
    t -= t % step
    t = max(t, step)
    while t > step and total % t != 0:
        t -= step
    return t


def _choose_tiles(b_padded, n_padded, target_bytes, tile_b):
    row_bytes = NUM_CLASSES * 4  # one float32 one-hot row
    if not tile_b:
        # Full batch per tile; grow TN toward the VMEM target.
        tb = b_padded
        max_tn = max(_LANE, (target_bytes // (tb * row_bytes)) // _LANE * _LANE)
        tn = _largest_divisor_tile(n_padded, max_tn, _LANE)
        # Keep >= 2 grid steps so v7x's second TensorCore isn't idle.
        if n_padded // tn < 2 and n_padded >= 2 * _LANE:
            tn = _largest_divisor_tile(n_padded, n_padded // 2, _LANE)
        return tb, tn
    # Large batch: tile B (multiple of 8, dividing padded B), then grow TN.
    tn = _LANE
    max_tb = max(_SUBLANE,
                 (target_bytes // (tn * row_bytes)) // _SUBLANE * _SUBLANE)
    tb = _largest_divisor_tile(b_padded, max_tb, _SUBLANE)
    max_tn = max(_LANE, (target_bytes // (tb * row_bytes)) // _LANE * _LANE)
    tn = _largest_divisor_tile(n_padded, max_tn, _LANE)
    return tb, tn


def model_mock_forward(x):
    """x: integer array of shape (B, ...). Returns (B, N, 256) float32."""
    B = x.shape[0]
    flat = x.reshape(B, -1).astype(jnp.int32)   # glue: flatten non-batch dims
    N = flat.shape[1]

    # Shift-left-by-one with last+1 appended, hoisted out of the kernel so the
    # kernel can be tiled over N without a +1-element halo.
    # TODO(synk): fold into the kernel via a +1-element input index offset to
    # save this ~1%-of-traffic wrapper copy.
    shifted = jnp.concatenate([flat[:, 1:], flat[:, -1:] + 1], axis=-1)

    target = _per_out_buffer_target_bytes()

    # Pad N to a multiple of 128 so ragged N stays in the big-tile pipelined
    # regime (padded rows one-hot class 0 and are sliced off below).
    Np = -(-N // _LANE) * _LANE

    # Tile over B too if a full-batch 128-wide tile already busts the budget.
    tile_b = B * _LANE * NUM_CLASSES * 4 > target
    Bp = -(-B // _SUBLANE) * _SUBLANE if tile_b else B

    if Np != N or Bp != B:
        shifted = jnp.pad(shifted, ((0, Bp - B), (0, Np - N)))

    tb, tn = _choose_tiles(Bp, Np, target, tile_b)
    grid = (Bp // tb, Np // tn)

    out_tile_bytes = tb * tn * NUM_CLASSES * 4
    in_tile_bytes = max(tb, _SUBLANE) * tn * 4
    vmem_limit = min(2 * out_tile_bytes + 2 * in_tile_bytes + (8 << 20),
                     56 << 20)

    cost = pl.CostEstimate(
        flops=0,            # no MXU work; the 256-wide compares are VPU filler
        transcendentals=0,
        bytes_accessed=Bp * Np * 4 + Bp * Np * NUM_CLASSES * 4,
    )

    out = pl.pallas_call(
        one_hot_kernel,
        out_shape=jax.ShapeDtypeStruct((Bp, Np, NUM_CLASSES), jnp.float32),
        grid=grid,
        in_specs=[pl.BlockSpec((tb, tn), lambda i, j: (i, j))],
        out_specs=pl.BlockSpec((tb, tn, NUM_CLASSES), lambda i, j: (i, j, 0)),
        compiler_params=pltpu.CompilerParams(
            dimension_semantics=("parallel", "parallel"),
            vmem_limit_bytes=vmem_limit,
        ),
        cost_estimate=cost,
    )(shifted)

    if Np != N or Bp != B:
        out = out[:B, :N, :]
    return out


def model_mock_reference(x):
    """Pure-JAX reference mirroring the PyTorch module."""
    B = x.shape[0]
    flat = x.reshape(B, -1).astype(jnp.int32)
    last = flat[:, -1:] + 1
    shifted = jnp.concatenate([flat[:, 1:], last], axis=-1)
    shifted = jnp.where(shifted > NUM_CLASSES - 1, 0, shifted)
    return jax.nn.one_hot(shifted, NUM_CLASSES, dtype=jnp.float32)


if __name__ == "__main__":
    key = jax.random.PRNGKey(0)
    # Small NCHW-like integer input: batch=2, channels=4, spatial=16x16 -> N=1024
    x = jax.random.randint(key, (2, 4, 16, 16), minval=0, maxval=256,
                           dtype=jnp.int32)

    out = model_mock_forward(x)
    out = jax.block_until_ready(out)

    ref = jax.block_until_ready(model_mock_reference(x))
    assert out.shape == (2, 4 * 16 * 16, NUM_CLASSES), out.shape
    assert out.dtype == jnp.float32
    assert bool(jnp.all(out == ref)), "Pallas kernel mismatch vs reference"

    print("KERNEL_OK")
</pallas_src>

<mosaic_0001>
module attributes {stable_mosaic.version = 11 : i64} {
  func.func @one_hot_kernel(%arg0: i32, %arg1: i32, %arg2: memref<2x512xi32, #tpu.memory_space<vmem>>, %arg3: memref<2x512x256xf32, #tpu.memory_space<vmem>>) attributes {dimension_semantics = [#tpu.dimension_semantics<parallel>, #tpu.dimension_semantics<parallel>], iteration_bounds = array<i64: 1, 2>, scalar_prefetch = 0 : i64, scratch_operands = 0 : i64, tpu.core_type = #tpu.core_type<tc>, window_params = [{transform_indices = @transform_0, window_bounds = array<i64: 2, 512>}, {transform_indices = @transform_1, window_bounds = array<i64: 2, 512, 256>}]} {
    %c0 = arith.constant 0 : index
    %c0_0 = arith.constant 0 : index
    %0 = vector.load %arg2[%c0, %c0_0] : memref<2x512xi32, #tpu.memory_space<vmem>>, vector<2x512xi32>
    %c255_i32 = arith.constant 255 : i32
    %1 = vector.broadcast %c255_i32 : i32 to vector<2x512xi32>
    %2 = arith.cmpi sgt, %0, %1 : vector<2x512xi32>
    %c0_i32 = arith.constant 0 : i32
    %3 = vector.broadcast %c0_i32 : i32 to vector<2x512xi32>
    %4 = arith.select %2, %3, %0 : vector<2x512xi1>, vector<2x512xi32>
    %5 = tpu.iota {dimensions = array<i32: 2>} : vector<1x1x256xi32>
    %6 = vector.shape_cast %4 : vector<2x512xi32> to vector<2x512x1xi32>
    %7 = vector.broadcast %6 : vector<2x512x1xi32> to vector<2x512x256xi32>
    %8 = vector.broadcast %5 : vector<1x1x256xi32> to vector<2x512x256xi32>
    %9 = arith.cmpi eq, %7, %8 : vector<2x512x256xi32>
    %10 = arith.extui %9 : vector<2x512x256xi1> to vector<2x512x256xi32>
    %11 = arith.sitofp %10 : vector<2x512x256xi32> to vector<2x512x256xf32>
    %c0_1 = arith.constant 0 : index
    %c0_2 = arith.constant 0 : index
    %c0_3 = arith.constant 0 : index
    %12 = vector.load %arg3[%c0_1, %c0_2, %c0_3] : memref<2x512x256xf32, #tpu.memory_space<vmem>>, vector<2x512x256xf32>
    tpu.vector_store %arg3[%c0_1, %c0_2, %c0_3], %11 {strides = array<i32>} : memref<2x512x256xf32, #tpu.memory_space<vmem>>, vector<2x512x256xf32>,
    return
  }
  func.func @transform_0(%arg0: i32, %arg1: i32) -> (i32, i32) {
    %c0_i32 = arith.constant 0 : i32
    return %arg0, %arg1 : i32, i32
  }
  func.func @transform_1(%arg0: i32, %arg1: i32) -> (i32, i32, i32) {
    %c0_i32 = arith.constant 0 : i32
    %c0_i32_0 = arith.constant 0 : i32
    return %arg0, %arg1, %c0_i32 : i32, i32, i32
  }
}

</mosaic_0001>

<bundles_post_ra>
// kernel: tpu_custom_call.1
= control target key start
LH: loop header
LB: loop body
LE: loop exit
PB: predicated region body
PF: predicated region fallthrough
CT: control target
= control target key end

     0   :  { %6 = vsyncpa [#allocation3], 0  ;;  %s3372_s0 = inlined_call_operand.hbm [shape: s32[2,1024], index: 0, kind: input, shape index: {}]   ;;  %s3373_s1 = inlined_call_operand.hbm [shape: f32[2,1024,256], index: 1, kind: output, shape index: {}]  }
   0x1   :  { %8 = vsyncpa [#allocation3 + $0x1], 0 }
   0x2   :  { %9 = vsyncpa [#allocation4], 0 }
   0x3   :  { %11 = vsyncpa [#allocation4 + $0x1], 0  ;;  %s2329_s6 = smov 0   ;;  %s2331_s7 = smov 0  }
   0x4   :  { %s2333_s8 = smov 0   ;;  %s2335_s9 = smov 0  }
   0x5   :  { %s2337_s10 = smov 0   ;;  %s2339_s11 = smov 0  }
   0x6 LB: > { %s1871_s12 = sadd.s32 4294967295, %s2307_s11   ;;  %s1872_s13 = sadd.s32 4294967294, %s2307_s11   ;;  %s2307_s11 = sphi %s2339_s11, %s17_s11   ;;  %s2303_s10 = sphi %s2337_s10, %s3389_s10   ;;  %s2299_s9 = sphi %s2335_s9, %s3388_s9   ;;  %s2295_s8 = sphi %s2333_s8, %s3387_s8   ;;  %s2291_s7 = sphi %s2331_s7, %s3386_s7   ;;  %s2287_s6 = sphi %s2329_s6, %s3385_s6  }
   0x7   : > { %s26_s14 = sadd.s32 1, %s2303_s10  ;;  %s38_s15 = sadd.s32 1, %s2295_s8 }
   0x8   : > { %p27_p0 = scmp.ge.s32.totalorder %s26_s14, 2  ;;  %p45_p1 = scmp.ne.s32.totalorder %s2295_s8, %s2291_s7 }
   0x9   : > { %p46_p2 = scmp.eq.s32.totalorder %s2307_s11, 0  ;;  %p51_p3 = scmp.ne.s32.totalorder %s2291_s7, %s2287_s6 }
   0xa   : > { %s3391_s14 = smov (%p27_p0, %s26_s14), 0  ;;  %p52_p5 = scmp.eq.s32.totalorder %s1871_s12, 0 }
   0xb   : > { %p2370_p4 = por %p46_p2, %p45_p1  ;;  %s34_s17 = ssub.s32 %s2303_s10, %s3391_s14 }
   0xc   : > { %p77_p6 = scmp.eq.s32.totalorder %s1871_s12, 1  ;;  %p36_p7 = scmp.eq.s32.totalorder %s34_s17, 0 }
   0xd   : > { %p2376_p8 = por %p52_p5, %p51_p3  ;;  %p83_p10 = scmp.eq.s32.totalorder %s1872_s13, 1 }
   0xe   : > { %p2380_p9 = por %p77_p6, %p45_p1  ;;  %p2164_p13 = scmp.lt.s32.totalorder %s2307_s11, 2 }
   0xf   : > { %s2385_s20 = scalar_select %p36_p7, %s2295_s8, %s38_s15  }
  0x10   : > { %s3377_s19 = scalar_select %p2380_p9, 1, 0 }
  0x11   : > { %p2387_p11 = por %p83_p10, %p51_p3  ;;  %s103_s22 = sand.u32 1, %s2295_s8  }
  0x12   : > { %s1875_s23 = sshll.u32 %s103_s22, 3  ;;  %s2143_s24 = sshll.u32 %s2303_s10, 7 }
  0x13   : > { %s3378_s21 = scalar_select %p2387_p11, 1, 0 }
  0x14   : > { %s2398_s27 = scalar_lea.hbm %s3372_s0, %s2143_s24  ;;  %s107_s28 = scalar_lea.vmem [#allocation2], %s1875_s23 }
  0x15   : > { %s117_s29 = sshll.u32 %s107_s28, 4  ;;  %p2404_p0 = pnand %p2164_p13, %p2370_p4  ;;  %s2400_s29 = int_to_ptr.vmem [resolvable:$true] %s117_s29 }
  0x16   : > { %s104_s2 = scalar_lea.sflag [#allocation3], %s103_s22  ;;  %s2223_s3 = scalar_lea.hbm %s2398_s27, 128 }
  0x17   : > { %p2224_p3 = scmp.ne.s32.totalorder %s2398_s27, %s2223_s3  ;;  %p2225_p5 = pneg %p2404_p0 }
  0x18   : > { %s2228_s12 = scalar_lea.hbm %s3372_s0, 256  ;;  %p2229_p4 = scmp.lt.u32.totalorder %s2398_s27, %s3372_s0 }
  0x19   : > { %p2226_p6 = pnand %p2225_p5, %p2224_p3  ;;  %p2230_p10 = scmp.lt.u32.totalorder %s2228_s12, %s2223_s3 }
  0x1a   : > { %p2232_p12 = scmp.lt.u32.totalorder %s2223_s3, %s2398_s27 }
  0x1b   : > { %p2227_p7 = pneg %p2226_p6  ;;  %p2231_p13 = por %p2230_p10, %p2229_p4 }
  0x1d   : > { %p2233_p1 = por %p2232_p12, %p2231_p13 }
  0x1f   : > { %p2234_p2 = pnand %p2233_p1, %p2227_p7 }
  0x21   : > { %2237 = shalt.err (!%p2234_p2)
}
  0x22   : > { %s2238_s16 = scalar_lea.vmem %s2400_s29, 128  ;;  %s2309_s17 = smov [#allocation2]  }
  0x23   : > { %p2239_p3 = scmp.ne.s32.totalorder %s2400_s29, %s2238_s16  ;;  %s2243_s22 = sshll.u32 %s2309_s17, 4  ;;  %s2244_s22 = int_to_ptr.vmem [resolvable:$false] %s2243_s22 }
  0x24   : > { %s2245_s23 = scalar_lea.vmem %s2244_s22, 256  ;;  %p2246_p9 = scmp.lt.s32.totalorder %s2400_s29, %s2244_s22 }
  0x25   : > { %p2241_p6 = pnand %p2239_p3, %p2225_p5  ;;  %p2247_p4 = scmp.lt.s32.totalorder %s2245_s23, %s2238_s16 }
  0x27   : > { %p2242_p11 = pneg %p2241_p6  ;;  %p2248_p10 = por %p2247_p4, %p2246_p9 }
  0x29   : > { %p2249_p12 = pnand %p2248_p10, %p2242_p11 }
  0x2b   : > { %2252 = shalt.err (!%p2249_p12)
}
  0x2c   : > { %2159 = dma.hbm_to_vmem [thread:$0]  (!%p2404_p0), %s2398_s27, 128, %s2400_s29, %s104_s2  }
  0x2d   : > { %p3380_p1 = scmp.lt.s32.totalorder %s2307_s11, 3  ;;  %p3381_p2 = scmp.ge.s32.totalorder %s2307_s11, 1 }
  0x2f   : > { %p123_p5 = pnand %p3381_p2, %p3380_p1 }
  0x30   : > { %s2440_s24 = sand.u32 (!%p123_p5), 1, %s2291_s7  }
  0x31   : > { %126 = sbr.rel (%p123_p5) target bundleno = 450 (0x1c2), region = 24  ;;  %s1879_s25 = sshll.u32 (!%p123_p5), %s2440_s24, 3 }
  0x32   : > { %s129_s26 = scalar_lea.sflag (!%p123_p5), [#allocation3], %s2440_s24  ;;  %s132_s28 = scalar_lea.vmem (!%p123_p5), [#allocation2], %s1879_s25 }
  0x38   : > { %2278 = dma.done.wait (%p2376_p8), %s129_s26, 128  }
  0x39   : > { %2280 = vsyncadd (%p2376_p8), %s129_s26, 4294967168  ;;  %v157_v0 = vlaneseq  ;;  %v2310_v1 = vmov 1983009808   ;;  %v154_v6 = vld [vmem:[%s132_s28] sm:$0xff]  ;;  %s1880_s18 = sshll.u32 %s2440_s24, 11  ;;  %v2311_v22 = vmov 0.0  }
  0x3a   : > { %v162_v2 = vunpack.c.l.s4 %v2310_v1  ;;  %vm155_vm0 = vcmp.gt.s32.totalorder %v154_v6, 255  ;;  %s2484_s27 = scalar_lea.vmem [#allocation5], %s1880_s18  ;;  %s1738_s29 = scalar_lea.sflag [#allocation4], %s2440_s24 }
  0x3b   : > { %v2449_v3 = vshrl.u32 %v157_v0, 7  ;;  %v156_v8 = vsel %vm155_vm0, 0, %v154_v6  ;;  %v2470_v18 = vand.u32 127, %v157_v0 }
  0x3c   : > { %v163_v4 = vunpack.c.0.s8 %v162_v2  ;;  %v160_v10 = vcombine.high %v156_v8, %v156_v8 }
  0x3d   : > { %v179_v7 = vsub.s32 0, %v2449_v3  ;;  %v2474_v19 = vadd.s32 128, %v2470_v18  ;;  %v2491_v29 = vsub.s32 1, %v2449_v3 }
  0x3e   : > { %v166_v5 = vsub.s32 %v163_v4, %v2449_v3 }
  0x40   : > { %v2453_v9 = vrot.slane %v156_v8, %v166_v5  ;;  %v2456_v12 = vrot.slane %v160_v10, %v166_v5 }
  0x42   : > { %v180_v11 = vrot.slane %v2453_v9, %v179_v7  ;;  %v314_v13 = vrot.slane %v2456_v12, %v179_v7  ;;  %v2461_v14 = vcombine.high %v2453_v9, %v2453_v9  ;;  %v2466_v16 = vcombine.high %v2456_v12, %v2456_v12 }
  0x43   : > { %v2507_v36 = vrot.slane %v2453_v9, %v2491_v29 }
  0x44   : > { %190 = vbcast.lane.b32.xlu1 %v180_v11, 272  ;;  %182 = vbcast.lane.b32.xlu0 %v180_v11, 256  ;;  %v247_v15 = vrot.slane %v2461_v14, %v179_v7  ;;  %v381_v17 = vrot.slane %v2466_v16, %v179_v7 }
  0x48   : > { %194 = vbcast.lane.b32.xlu1 %v180_v11, 280  ;;  %186 = vbcast.lane.b32.xlu0 %v180_v11, 264 }
  0x4c   : > { %202 = vbcast.lane.b32.xlu1 %v180_v11, 296  ;;  %198 = vbcast.lane.b32.xlu0 %v180_v11, 288 }
  0x50   : > { %210 = vbcast.lane.b32.xlu1 %v180_v11, 312  ;;  %206 = vbcast.lane.b32.xlu0 %v180_v11, 304 }
  0x54   : > { %218 = vbcast.lane.b32.xlu1 %v180_v11, 328  ;;  %214 = vbcast.lane.b32.xlu0 %v180_v11, 320 }
  0x58   : > { %226 = vbcast.lane.b32.xlu1 %v180_v11, 344  ;;  %222 = vbcast.lane.b32.xlu0 %v180_v11, 336 }
  0x5c   : > { %234 = vbcast.lane.b32.xlu1 %v180_v11, 360  ;;  %230 = vbcast.lane.b32.xlu0 %v180_v11, 352 }
  0x60   : > { %242 = vbcast.lane.b32.xlu1 %v180_v11, 376  ;;  %238 = vbcast.lane.b32.xlu0 %v180_v11, 368 }
  0x64   : > { %253 = vbcast.lane.b32.xlu1 %v247_v15, 264  ;;  %249 = vbcast.lane.b32.xlu0 %v247_v15, 256 }
  0x68   : > { %261 = vbcast.lane.b32.xlu1 %v247_v15, 280  ;;  %257 = vbcast.lane.b32.xlu0 %v247_v15, 272 }
  0x6c   : > { %269 = vbcast.lane.b32.xlu1 %v247_v15, 296  ;;  %265 = vbcast.lane.b32.xlu0 %v247_v15, 288 }
  0x70   : > { %277 = vbcast.lane.b32.xlu1 %v247_v15, 312  ;;  %273 = vbcast.lane.b32.xlu0 %v247_v15, 304 }
  0x74   : > { %285 = vbcast.lane.b32.xlu1 %v247_v15, 328  ;;  %281 = vbcast.lane.b32.xlu0 %v247_v15, 320 }
  0x78   : > { %293 = vbcast.lane.b32.xlu1 %v247_v15, 344  ;;  %289 = vbcast.lane.b32.xlu0 %v247_v15, 336 }
  0x7c   : > { %301 = vbcast.lane.b32.xlu1 %v247_v15, 360  ;;  %297 = vbcast.lane.b32.xlu0 %v247_v15, 352 }
  0x80   : > { %309 = vbcast.lane.b32.xlu1 %v247_v15, 376  ;;  %305 = vbcast.lane.b32.xlu0 %v247_v15, 368 }
  0x84   : > { %320 = vbcast.lane.b32.xlu1 %v314_v13, 264  ;;  %316 = vbcast.lane.b32.xlu0 %v314_v13, 256 }
  0x88   : > { %328 = vbcast.lane.b32.xlu1 %v314_v13, 280  ;;  %324 = vbcast.lane.b32.xlu0 %v314_v13, 272 }
  0x8c   : > { %336 = vbcast.lane.b32.xlu1 %v314_v13, 296  ;;  %332 = vbcast.lane.b32.xlu0 %v314_v13, 288 }
  0x90   : > { %344 = vbcast.lane.b32.xlu1 %v314_v13, 312  ;;  %340 = vbcast.lane.b32.xlu0 %v314_v13, 304 }
  0x94   : > { %352 = vbcast.lane.b32.xlu1 %v314_v13, 328  ;;  %348 = vbcast.lane.b32.xlu0 %v314_v13, 320 }
  0x98   : > { %360 = vbcast.lane.b32.xlu1 %v314_v13, 344  ;;  %356 = vbcast.lane.b32.xlu0 %v314_v13, 336 }
  0x9c   : > { %368 = vbcast.lane.b32.xlu1 %v314_v13, 360  ;;  %364 = vbcast.lane.b32.xlu0 %v314_v13, 352 }
  0xa0   : > { %376 = vbcast.lane.b32.xlu1 %v314_v13, 376  ;;  %372 = vbcast.lane.b32.xlu0 %v314_v13, 368 }
  0xa4   : > { %387 = vbcast.lane.b32.xlu1 %v381_v17, 264  ;;  %383 = vbcast.lane.b32.xlu0 %v381_v17, 256 }
  0xa8   : > { %395 = vbcast.lane.b32.xlu1 %v381_v17, 280  ;;  %391 = vbcast.lane.b32.xlu0 %v381_v17, 272 }
  0xac   : > { %403 = vbcast.lane.b32.xlu1 %v381_v17, 296  ;;  %399 = vbcast.lane.b32.xlu0 %v381_v17, 288 }
  0xb0   : > { %411 = vbcast.lane.b32.xlu1 %v381_v17, 312  ;;  %407 = vbcast.lane.b32.xlu0 %v381_v17, 304 }
  0xb4   : > { %419 = vbcast.lane.b32.xlu1 %v381_v17, 328  ;;  %415 = vbcast.lane.b32.xlu0 %v381_v17, 320 }
  0xb6   : > { %v191_v20 = vpop.permute.xlu1 %190  ;;  %v183_v21 = vpop.permute.xlu0 %182 }
  0xb7   : > { %vm717_vm1 = vcmp.eq.s32.totalorder %v191_v20, %v2470_v18  ;;  %vm718_vm2 = vcmp.eq.s32.totalorder %v191_v20, %v2474_v19  ;;  %vm713_vm3 = vcmp.eq.s32.totalorder %v183_v21, %v2470_v18  ;;  %vm714_vm4 = vcmp.eq.s32.totalorder %v183_v21, %v2474_v19 }
  0xb8   : > { %v1885_v23 = vsel %vm717_vm1, 1.0, %v2311_v22  ;;  %v1886_v24 = vsel %vm718_vm2, 1.0, %v2311_v22  ;;  %v1881_v25 = vsel %vm713_vm3, 1.0, %v2311_v22  ;;  %v1882_v26 = vsel %vm714_vm4, 1.0, %v2311_v22  ;;  %427 = vbcast.lane.b32.xlu1 %v381_v17, 344  ;;  %423 = vbcast.lane.b32.xlu0 %v381_v17, 336 }
  0xb9   : > { %1485 = vst [vmem:[%s2484_s27 + $0x20] sm:$0xff] %v1885_v23  ;;  %1486 = vst [vmem:[%s2484_s27 + $0x28] sm:$0xff] %v1886_v24 }
  0xba   : > { %1481 = vst [vmem:[%s2484_s27] sm:$0xff] %v1881_v25  ;;  %1482 = vst [vmem:[%s2484_s27 + $0x8] sm:$0xff] %v1882_v26  ;;  %v195_v27 = vpop.permute.xlu1 %194  ;;  %v187_v28 = vpop.permute.xlu0 %186 }
  0xbb   : > { %vm719_vm5 = vcmp.eq.s32.totalorder %v195_v27, %v2470_v18  ;;  %vm720_vm6 = vcmp.eq.s32.totalorder %v195_v27, %v2474_v19  ;;  %vm715_vm7 = vcmp.eq.s32.totalorder %v187_v28, %v2470_v18  ;;  %vm716_vm8 = vcmp.eq.s32.totalorder %v187_v28, %v2474_v19 }
  0xbc   : > { %v1887_v30 = vsel %vm719_vm5, 1.0, %v2311_v22  ;;  %v1888_v31 = vsel %vm720_vm6, 1.0, %v2311_v22  ;;  %v1883_v32 = vsel %vm715_vm7, 1.0, %v2311_v22  ;;  %v1884_v33 = vsel %vm716_vm8, 1.0, %v2311_v22  ;;  %435 = vbcast.lane.b32.xlu1 %v381_v17, 360  ;;  %431 = vbcast.lane.b32.xlu0 %v381_v17, 352 }
  0xbd   : > { %1487 = vst [vmem:[%s2484_s27 + $0x30] sm:$0xff] %v1887_v30  ;;  %1488 = vst [vmem:[%s2484_s27 + $0x38] sm:$0xff] %v1888_v31  ;;  %v2621_v27 = vrot.slane %v2461_v14, %v2491_v29 }
  0xbe   : > { %1483 = vst [vmem:[%s2484_s27 + $0x10] sm:$0xff] %v1883_v32  ;;  %1484 = vst [vmem:[%s2484_s27 + $0x18] sm:$0xff] %v1884_v33  ;;  %v203_v34 = vpop.permute.xlu1 %202  ;;  %v199_v35 = vpop.permute.xlu0 %198 }
  0xbf   : > { %vm723_vm9 = vcmp.eq.s32.totalorder %v203_v34, %v2470_v18  ;;  %vm724_vm10 = vcmp.eq.s32.totalorder %v203_v34, %v2474_v19  ;;  %vm721_vm11 = vcmp.eq.s32.totalorder %v199_v35, %v2470_v18  ;;  %vm722_vm12 = vcmp.eq.s32.totalorder %v199_v35, %v2474_v19 }
  0xc0   : > { %v1891_v37 = vsel %vm723_vm9, 1.0, %v2311_v22  ;;  %v1892_v38 = vsel %vm724_vm10, 1.0, %v2311_v22  ;;  %v1889_v39 = vsel %vm721_vm11, 1.0, %v2311_v22  ;;  %v1890_v40 = vsel %vm722_vm12, 1.0, %v2311_v22  ;;  %443 = vbcast.lane.b32.xlu1 %v381_v17, 376  ;;  %439 = vbcast.lane.b32.xlu0 %v381_v17, 368 }
  0xc1   : > { %1491 = vst [vmem:[%s2484_s27 + $0x50] sm:$0xff] %v1891_v37  ;;  %1492 = vst [vmem:[%s2484_s27 + $0x58] sm:$0xff] %v1892_v38 }
  0xc2   : > { %1489 = vst [vmem:[%s2484_s27 + $0x40] sm:$0xff] %v1889_v39  ;;  %1490 = vst [vmem:[%s2484_s27 + $0x48] sm:$0xff] %v1890_v40  ;;  %v211_v41 = vpop.permute.xlu1 %210  ;;  %v207_v42 = vpop.permute.xlu0 %206 }
  0xc3   : > { %vm727_vm13 = vcmp.eq.s32.totalorder %v211_v41, %v2470_v18  ;;  %vm728_vm14 = vcmp.eq.s32.totalorder %v211_v41, %v2474_v19  ;;  %vm725_vm15 = vcmp.eq.s32.totalorder %v207_v42, %v2470_v18  ;;  %vm726_vm0 = vcmp.eq.s32.totalorder %v207_v42, %v2474_v19 }
  0xc4   : > { %v1895_v43 = vsel %vm727_vm13, 1.0, %v2311_v22  ;;  %v1896_v44 = vsel %vm728_vm14, 1.0, %v2311_v22  ;;  %v1893_v45 = vsel %vm725_vm15, 1.0, %v2311_v22  ;;  %v1894_v46 = vsel %vm726_vm0, 1.0, %v2311_v22  ;;  %454 = vbcast.lane.b32.xlu1 %v2507_v36, 264  ;;  %450 = vbcast.lane.b32.xlu0 %v2507_v36, 256 }
  0xc5   : > { %1495 = vst [vmem:[%s2484_s27 + $0x70] sm:$0xff] %v1895_v43  ;;  %1496 = vst [vmem:[%s2484_s27 + $0x78] sm:$0xff] %v1896_v44 }
  0xc6   : > { %1493 = vst [vmem:[%s2484_s27 + $0x60] sm:$0xff] %v1893_v45  ;;  %1494 = vst [vmem:[%s2484_s27 + $0x68] sm:$0xff] %v1894_v46  ;;  %v219_v47 = vpop.permute.xlu1 %218  ;;  %v215_v48 = vpop.permute.xlu0 %214 }
  0xc7   : > { %vm731_vm1 = vcmp.eq.s32.totalorder %v219_v47, %v2470_v18  ;;  %vm732_vm2 = vcmp.eq.s32.totalorder %v219_v47, %v2474_v19  ;;  %vm729_vm3 = vcmp.eq.s32.totalorder %v215_v48, %v2470_v18  ;;  %vm730_vm4 = vcmp.eq.s32.totalorder %v215_v48, %v2474_v19 }
  0xc8   : > { %v1899_v49 = vsel %vm731_vm1, 1.0, %v2311_v22  ;;  %v1900_v50 = vsel %vm732_vm2, 1.0, %v2311_v22  ;;  %v1897_v51 = vsel %vm729_vm3, 1.0, %v2311_v22  ;;  %v1898_v52 = vsel %vm730_vm4, 1.0, %v2311_v22  ;;  %462 = vbcast.lane.b32.xlu1 %v2507_v36, 280  ;;  %458 = vbcast.lane.b32.xlu0 %v2507_v36, 272 }
  0xc9   : > { %1499 = vst [vmem:[%s2484_s27 + $0x90] sm:$0xff] %v1899_v49  ;;  %1500 = vst [vmem:[%s2484_s27 + $0x98] sm:$0xff] %v1900_v50 }
  0xca   : > { %1497 = vst [vmem:[%s2484_s27 + $0x80] sm:$0xff] %v1897_v51  ;;  %1498 = vst [vmem:[%s2484_s27 + $0x88] sm:$0xff] %v1898_v52  ;;  %v227_v53 = vpop.permute.xlu1 %226  ;;  %v223_v54 = vpop.permute.xlu0 %222 }
  0xcb   : > { %vm735_vm5 = vcmp.eq.s32.totalorder %v227_v53, %v2470_v18  ;;  %vm736_vm6 = vcmp.eq.s32.totalorder %v227_v53, %v2474_v19  ;;  %vm733_vm7 = vcmp.eq.s32.totalorder %v223_v54, %v2470_v18  ;;  %vm734_vm8 = vcmp.eq.s32.totalorder %v223_v54, %v2474_v19 }
  0xcc   : > { %v1903_v55 = vsel %vm735_vm5, 1.0, %v2311_v22  ;;  %v1904_v56 = vsel %vm736_vm6, 1.0, %v2311_v22  ;;  %v1901_v57 = vsel %vm733_vm7, 1.0, %v2311_v22  ;;  %v1902_v58 = vsel %vm734_vm8, 1.0, %v2311_v22  ;;  %470 = vbcast.lane.b32.xlu1 %v2507_v36, 296  ;;  %466 = vbcast.lane.b32.xlu0 %v2507_v36, 288 }
  0xcd   : > { %1503 = vst [vmem:[%s2484_s27 + $0xb0] sm:$0xff] %v1903_v55  ;;  %1504 = vst [vmem:[%s2484_s27 + $0xb8] sm:$0xff] %v1904_v56 }
  0xce   : > { %1501 = vst [vmem:[%s2484_s27 + $0xa0] sm:$0xff] %v1901_v57  ;;  %1502 = vst [vmem:[%s2484_s27 + $0xa8] sm:$0xff] %v1902_v58  ;;  %v235_v59 = vpop.permute.xlu1 %234  ;;  %v231_v60 = vpop.permute.xlu0 %230 }
  0xcf   : > { %vm739_vm9 = vcmp.eq.s32.totalorder %v235_v59, %v2470_v18  ;;  %vm740_vm10 = vcmp.eq.s32.totalorder %v235_v59, %v2474_v19  ;;  %vm737_vm11 = vcmp.eq.s32.totalorder %v231_v60, %v2470_v18  ;;  %vm738_vm12 = vcmp.eq.s32.totalorder %v231_v60, %v2474_v19 }
  0xd0   : > { %v1907_v61 = vsel %vm739_vm9, 1.0, %v2311_v22  ;;  %v1908_v62 = vsel %vm740_vm10, 1.0, %v2311_v22  ;;  %v1905_v63 = vsel %vm737_vm11, 1.0, %v2311_v22  ;;  %v1906_v0 = vsel %vm738_vm12, 1.0, %v2311_v22  ;;  %478 = vbcast.lane.b32.xlu1 %v2507_v36, 312  ;;  %474 = vbcast.lane.b32.xlu0 %v2507_v36, 304 }
  0xd1   : > { %1507 = vst [vmem:[%s2484_s27 + $0xd0] sm:$0xff] %v1907_v61  ;;  %1508 = vst [vmem:[%s2484_s27 + $0xd8] sm:$0xff] %v1908_v62 }
  0xd2   : > { %1505 = vst [vmem:[%s2484_s27 + $0xc0] sm:$0xff] %v1905_v63  ;;  %1506 = vst [vmem:[%s2484_s27 + $0xc8] sm:$0xff] %v1906_v0  ;;  %v243_v1 = vpop.permute.xlu1 %242  ;;  %v239_v2 = vpop.permute.xlu0 %238 }
  0xd3   : > { %vm743_vm13 = vcmp.eq.s32.totalorder %v243_v1, %v2470_v18  ;;  %vm744_vm14 = vcmp.eq.s32.totalorder %v243_v1, %v2474_v19  ;;  %vm741_vm15 = vcmp.eq.s32.totalorder %v239_v2, %v2470_v18  ;;  %vm742_vm0 = vcmp.eq.s32.totalorder %v239_v2, %v2474_v19 }
  0xd4   : > { %v1911_v3 = vsel %vm743_vm13, 1.0, %v2311_v22  ;;  %v1912_v4 = vsel %vm744_vm14, 1.0, %v2311_v22  ;;  %v1909_v5 = vsel %vm741_vm15, 1.0, %v2311_v22  ;;  %v1910_v6 = vsel %vm742_vm0, 1.0, %v2311_v22  ;;  %486 = vbcast.lane.b32.xlu1 %v2507_v36, 328  ;;  %482 = vbcast.lane.b32.xlu0 %v2507_v36, 320 }
  0xd5   : > { %1511 = vst [vmem:[%s2484_s27 + $0xf0] sm:$0xff] %v1911_v3  ;;  %1512 = vst [vmem:[%s2484_s27 + $0xf8] sm:$0xff] %v1912_v4 }
  0xd6   : > { %1509 = vst [vmem:[%s2484_s27 + $0xe0] sm:$0xff] %v1909_v5  ;;  %1510 = vst [vmem:[%s2484_s27 + $0xe8] sm:$0xff] %v1910_v6  ;;  %v254_v7 = vpop.permute.xlu1 %253  ;;  %v250_v8 = vpop.permute.xlu0 %249 }
  0xd7   : > { %vm747_vm1 = vcmp.eq.s32.totalorder %v254_v7, %v2470_v18  ;;  %vm748_vm2 = vcmp.eq.s32.totalorder %v254_v7, %v2474_v19  ;;  %vm745_vm3 = vcmp.eq.s32.totalorder %v250_v8, %v2470_v18  ;;  %vm746_vm4 = vcmp.eq.s32.totalorder %v250_v8, %v2474_v19 }
  0xd8   : > { %v1915_v9 = vsel %vm747_vm1, 1.0, %v2311_v22  ;;  %v1916_v10 = vsel %vm748_vm2, 1.0, %v2311_v22  ;;  %v1913_v11 = vsel %vm745_vm3, 1.0, %v2311_v22  ;;  %v1914_v13 = vsel %vm746_vm4, 1.0, %v2311_v22  ;;  %494 = vbcast.lane.b32.xlu1 %v2507_v36, 344  ;;  %490 = vbcast.lane.b32.xlu0 %v2507_v36, 336 }
  0xd9   : > { %1515 = vst [vmem:[%s2484_s27 + $0x110] sm:$0xff] %v1915_v9  ;;  %1516 = vst [vmem:[%s2484_s27 + $0x118] sm:$0xff] %v1916_v10 }
  0xda   : > { %1513 = vst [vmem:[%s2484_s27 + $0x100] sm:$0xff] %v1913_v11  ;;  %1514 = vst [vmem:[%s2484_s27 + $0x108] sm:$0xff] %v1914_v13  ;;  %v262_v15 = vpop.permute.xlu1 %261  ;;  %v258_v17 = vpop.permute.xlu0 %257  ;;  %v2737_v13 = vrot.slane %v2456_v12, %v2491_v29 }
  0xdb   : > { %vm751_vm5 = vcmp.eq.s32.totalorder %v262_v15, %v2470_v18  ;;  %vm752_vm6 = vcmp.eq.s32.totalorder %v262_v15, %v2474_v19  ;;  %vm749_vm7 = vcmp.eq.s32.totalorder %v258_v17, %v2470_v18  ;;  %vm750_vm8 = vcmp.eq.s32.totalorder %v258_v17, %v2474_v19 }
  0xdc   : > { %v1919_v20 = vsel %vm751_vm5, 1.0, %v2311_v22  ;;  %v1920_v21 = vsel %vm752_vm6, 1.0, %v2311_v22  ;;  %v1917_v23 = vsel %vm749_vm7, 1.0, %v2311_v22  ;;  %v1918_v24 = vsel %vm750_vm8, 1.0, %v2311_v22  ;;  %502 = vbcast.lane.b32.xlu1 %v2507_v36, 360  ;;  %498 = vbcast.lane.b32.xlu0 %v2507_v36, 352 }
  0xdd   : > { %1519 = vst [vmem:[%s2484_s27 + $0x130] sm:$0xff] %v1919_v20  ;;  %1520 = vst [vmem:[%s2484_s27 + $0x138] sm:$0xff] %v1920_v21 }
  0xde   : > { %1517 = vst [vmem:[%s2484_s27 + $0x120] sm:$0xff] %v1917_v23  ;;  %1518 = vst [vmem:[%s2484_s27 + $0x128] sm:$0xff] %v1918_v24  ;;  %v270_v25 = vpop.permute.xlu1 %269  ;;  %v266_v26 = vpop.permute.xlu0 %265 }
  0xdf   : > { %vm755_vm9 = vcmp.eq.s32.totalorder %v270_v25, %v2470_v18  ;;  %vm756_vm10 = vcmp.eq.s32.totalorder %v270_v25, %v2474_v19  ;;  %vm753_vm11 = vcmp.eq.s32.totalorder %v266_v26, %v2470_v18  ;;  %vm754_vm12 = vcmp.eq.s32.totalorder %v266_v26, %v2474_v19 }
  0xe0   : > { %v1923_v28 = vsel %vm755_vm9, 1.0, %v2311_v22  ;;  %v1924_v30 = vsel %vm756_vm10, 1.0, %v2311_v22  ;;  %v1921_v31 = vsel %vm753_vm11, 1.0, %v2311_v22  ;;  %v1922_v32 = vsel %vm754_vm12, 1.0, %v2311_v22  ;;  %510 = vbcast.lane.b32.xlu1 %v2507_v36, 376  ;;  %506 = vbcast.lane.b32.xlu0 %v2507_v36, 368 }
  0xe1   : > { %1523 = vst [vmem:[%s2484_s27 + $0x150] sm:$0xff] %v1923_v28  ;;  %1524 = vst [vmem:[%s2484_s27 + $0x158] sm:$0xff] %v1924_v30 }
  0xe2   : > { %1521 = vst [vmem:[%s2484_s27 + $0x140] sm:$0xff] %v1921_v31  ;;  %1522 = vst [vmem:[%s2484_s27 + $0x148] sm:$0xff] %v1922_v32  ;;  %v278_v14 = vpop.permute.xlu1 %277  ;;  %v274_v33 = vpop.permute.xlu0 %273 }
  0xe3   : > { %vm759_vm13 = vcmp.eq.s32.totalorder %v278_v14, %v2470_v18  ;;  %vm760_vm14 = vcmp.eq.s32.totalorder %v278_v14, %v2474_v19  ;;  %vm757_vm15 = vcmp.eq.s32.totalorder %v274_v33, %v2470_v18  ;;  %vm758_vm0 = vcmp.eq.s32.totalorder %v274_v33, %v2474_v19 }
  0xe4   : > { %v1927_v34 = vsel %vm759_vm13, 1.0, %v2311_v22  ;;  %v1928_v35 = vsel %vm760_vm14, 1.0, %v2311_v22  ;;  %v1925_v36 = vsel %vm757_vm15, 1.0, %v2311_v22  ;;  %v1926_v37 = vsel %vm758_vm0, 1.0, %v2311_v22  ;;  %521 = vbcast.lane.b32.xlu1 %v2621_v27, 264  ;;  %517 = vbcast.lane.b32.xlu0 %v2621_v27, 256 }
  0xe5   : > { %1527 = vst [vmem:[%s2484_s27 + $0x170] sm:$0xff] %v1927_v34  ;;  %1528 = vst [vmem:[%s2484_s27 + $0x178] sm:$0xff] %v1928_v35 }
  0xe6   : > { %1525 = vst [vmem:[%s2484_s27 + $0x160] sm:$0xff] %v1925_v36  ;;  %1526 = vst [vmem:[%s2484_s27 + $0x168] sm:$0xff] %v1926_v37  ;;  %v286_v38 = vpop.permute.xlu1 %285  ;;  %v282_v39 = vpop.permute.xlu0 %281 }
  0xe7   : > { %vm763_vm1 = vcmp.eq.s32.totalorder %v286_v38, %v2470_v18  ;;  %vm764_vm2 = vcmp.eq.s32.totalorder %v286_v38, %v2474_v19  ;;  %vm761_vm3 = vcmp.eq.s32.totalorder %v282_v39, %v2470_v18  ;;  %vm762_vm4 = vcmp.eq.s32.totalorder %v282_v39, %v2474_v19 }
  0xe8   : > { %v1931_v40 = vsel %vm763_vm1, 1.0, %v2311_v22  ;;  %v1932_v41 = vsel %vm764_vm2, 1.0, %v2311_v22  ;;  %v1929_v42 = vsel %vm761_vm3, 1.0, %v2311_v22  ;;  %v1930_v43 = vsel %vm762_vm4, 1.0, %v2311_v22  ;;  %529 = vbcast.lane.b32.xlu1 %v2621_v27, 280  ;;  %525 = vbcast.lane.b32.xlu0 %v2621_v27, 272 }
  0xe9   : > { %1531 = vst [vmem:[%s2484_s27 + $0x190] sm:$0xff] %v1931_v40  ;;  %1532 = vst [vmem:[%s2484_s27 + $0x198] sm:$0xff] %v1932_v41 }
  0xea   : > { %1529 = vst [vmem:[%s2484_s27 + $0x180] sm:$0xff] %v1929_v42  ;;  %1530 = vst [vmem:[%s2484_s27 + $0x188] sm:$0xff] %v1930_v43  ;;  %v294_v44 = vpop.permute.xlu1 %293  ;;  %v290_v45 = vpop.permute.xlu0 %289 }
  0xeb   : > { %vm767_vm5 = vcmp.eq.s32.totalorder %v294_v44, %v2470_v18  ;;  %vm768_vm6 = vcmp.eq.s32.totalorder %v294_v44, %v2474_v19  ;;  %vm765_vm7 = vcmp.eq.s32.totalorder %v290_v45, %v2470_v18  ;;  %vm766_vm8 = vcmp.eq.s32.totalorder %v290_v45, %v2474_v19 }
  0xec   : > { %v1935_v46 = vsel %vm767_vm5, 1.0, %v2311_v22  ;;  %v1936_v47 = vsel %vm768_vm6, 1.0, %v2311_v22  ;;  %v1933_v48 = vsel %vm765_vm7, 1.0, %v2311_v22  ;;  %v1934_v49 = vsel %vm766_vm8, 1.0, %v2311_v22  ;;  %537 = vbcast.lane.b32.xlu1 %v2621_v27, 296  ;;  %533 = vbcast.lane.b32.xlu0 %v2621_v27, 288 }
  0xed   : > { %1535 = vst [vmem:[%s2484_s27 + $0x1b0] sm:$0xff] %v1935_v46  ;;  %1536 = vst [vmem:[%s2484_s27 + $0x1b8] sm:$0xff] %v1936_v47 }
  0xee   : > { %1533 = vst [vmem:[%s2484_s27 + $0x1a0] sm:$0xff] %v1933_v48  ;;  %1534 = vst [vmem:[%s2484_s27 + $0x1a8] sm:$0xff] %v1934_v49  ;;  %v302_v50 = vpop.permute.xlu1 %301  ;;  %v298_v51 = vpop.permute.xlu0 %297 }
  0xef   : > { %vm771_vm9 = vcmp.eq.s32.totalorder %v302_v50, %v2470_v18  ;;  %vm772_vm10 = vcmp.eq.s32.totalorder %v302_v50, %v2474_v19  ;;  %vm769_vm11 = vcmp.eq.s32.totalorder %v298_v51, %v2470_v18  ;;  %vm770_vm12 = vcmp.eq.s32.totalorder %v298_v51, %v2474_v19 }
  0xf0   : > { %v1939_v52 = vsel %vm771_vm9, 1.0, %v2311_v22  ;;  %v1940_v53 = vsel %vm772_vm10, 1.0, %v2311_v22  ;;  %v1937_v54 = vsel %vm769_vm11, 1.0, %v2311_v22  ;;  %v1938_v55 = vsel %vm770_vm12, 1.0, %v2311_v22  ;;  %545 = vbcast.lane.b32.xlu1 %v2621_v27, 312  ;;  %541 = vbcast.lane.b32.xlu0 %v2621_v27, 304 }
  0xf1   : > { %1539 = vst [vmem:[%s2484_s27 + $0x1d0] sm:$0xff] %v1939_v52  ;;  %1540 = vst [vmem:[%s2484_s27 + $0x1d8] sm:$0xff] %v1940_v53 }
  0xf2   : > { %1537 = vst [vmem:[%s2484_s27 + $0x1c0] sm:$0xff] %v1937_v54  ;;  %1538 = vst [vmem:[%s2484_s27 + $0x1c8] sm:$0xff] %v1938_v55  ;;  %v310_v56 = vpop.permute.xlu1 %309  ;;  %v306_v57 = vpop.permute.xlu0 %305 }
  0xf3   : > { %vm775_vm13 = vcmp.eq.s32.totalorder %v310_v56, %v2470_v18  ;;  %vm776_vm14 = vcmp.eq.s32.totalorder %v310_v56, %v2474_v19  ;;  %vm773_vm15 = vcmp.eq.s32.totalorder %v306_v57, %v2470_v18  ;;  %vm774_vm0 = vcmp.eq.s32.totalorder %v306_v57, %v2474_v19 }
  0xf4   : > { %v1943_v58 = vsel %vm775_vm13, 1.0, %v2311_v22  ;;  %v1944_v59 = vsel %vm776_vm14, 1.0, %v2311_v22  ;;  %v1941_v60 = vsel %vm773_vm15, 1.0, %v2311_v22  ;;  %v1942_v61 = vsel %vm774_vm0, 1.0, %v2311_v22  ;;  %553 = vbcast.lane.b32.xlu1 %v2621_v27, 328  ;;  %549 = vbcast.lane.b32.xlu0 %v2621_v27, 320 }
  0xf5   : > { %1543 = vst [vmem:[%s2484_s27 + $0x1f0] sm:$0xff] %v1943_v58  ;;  %1544 = vst [vmem:[%s2484_s27 + $0x1f8] sm:$0xff] %v1944_v59 }
  0xf6   : > { %1541 = vst [vmem:[%s2484_s27 + $0x1e0] sm:$0xff] %v1941_v60  ;;  %1542 = vst [vmem:[%s2484_s27 + $0x1e8] sm:$0xff] %v1942_v61  ;;  %v321_v62 = vpop.permute.xlu1 %320  ;;  %v317_v63 = vpop.permute.xlu0 %316 }
  0xf7   : > { %vm779_vm1 = vcmp.eq.s32.totalorder %v321_v62, %v2470_v18  ;;  %vm780_vm2 = vcmp.eq.s32.totalorder %v321_v62, %v2474_v19  ;;  %vm777_vm3 = vcmp.eq.s32.totalorder %v317_v63, %v2470_v18  ;;  %vm778_vm4 = vcmp.eq.s32.totalorder %v317_v63, %v2474_v19 }
  0xf8   : > { %v1947_v0 = vsel %vm779_vm1, 1.0, %v2311_v22  ;;  %v1948_v1 = vsel %vm780_vm2, 1.0, %v2311_v22  ;;  %v1945_v2 = vsel %vm777_vm3, 1.0, %v2311_v22  ;;  %v1946_v3 = vsel %vm778_vm4, 1.0, %v2311_v22  ;;  %561 = vbcast.lane.b32.xlu1 %v2621_v27, 344  ;;  %557 = vbcast.lane.b32.xlu0 %v2621_v27, 336 }
  0xf9   : > { %1547 = vst [vmem:[%s2484_s27 + $0x210] sm:$0xff] %v1947_v0  ;;  %1548 = vst [vmem:[%s2484_s27 + $0x218] sm:$0xff] %v1948_v1 }
  0xfa   : > { %1545 = vst [vmem:[%s2484_s27 + $0x200] sm:$0xff] %v1945_v2  ;;  %1546 = vst [vmem:[%s2484_s27 + $0x208] sm:$0xff] %v1946_v3  ;;  %v329_v4 = vpop.permute.xlu1 %328  ;;  %v325_v5 = vpop.permute.xlu0 %324  ;;  %v2853_v2 = vrot.slane %v2466_v16, %v2491_v29 }
  0xfb   : > { %vm783_vm5 = vcmp.eq.s32.totalorder %v329_v4, %v2470_v18  ;;  %vm784_vm6 = vcmp.eq.s32.totalorder %v329_v4, %v2474_v19  ;;  %vm781_vm7 = vcmp.eq.s32.totalorder %v325_v5, %v2470_v18  ;;  %vm782_vm8 = vcmp.eq.s32.totalorder %v325_v5, %v2474_v19 }
  0xfc   : > { %v1951_v6 = vsel %vm783_vm5, 1.0, %v2311_v22  ;;  %v1952_v7 = vsel %vm784_vm6, 1.0, %v2311_v22  ;;  %v1949_v8 = vsel %vm781_vm7, 1.0, %v2311_v22  ;;  %v1950_v9 = vsel %vm782_vm8, 1.0, %v2311_v22  ;;  %569 = vbcast.lane.b32.xlu1 %v2621_v27, 360  ;;  %565 = vbcast.lane.b32.xlu0 %v2621_v27, 352 }
  0xfd   : > { %1551 = vst [vmem:[%s2484_s27 + $0x230] sm:$0xff] %v1951_v6  ;;  %1552 = vst [vmem:[%s2484_s27 + $0x238] sm:$0xff] %v1952_v7 }
  0xfe   : > { %1549 = vst [vmem:[%s2484_s27 + $0x220] sm:$0xff] %v1949_v8  ;;  %1550 = vst [vmem:[%s2484_s27 + $0x228] sm:$0xff] %v1950_v9  ;;  %v337_v10 = vpop.permute.xlu1 %336  ;;  %v333_v11 = vpop.permute.xlu0 %332 }
  0xff   : > { %vm787_vm9 = vcmp.eq.s32.totalorder %v337_v10, %v2470_v18  ;;  %vm788_vm10 = vcmp.eq.s32.totalorder %v337_v10, %v2474_v19  ;;  %vm785_vm11 = vcmp.eq.s32.totalorder %v333_v11, %v2470_v18  ;;  %vm786_vm12 = vcmp.eq.s32.totalorder %v333_v11, %v2474_v19 }
 0x100   : > { %v1955_v15 = vsel %vm787_vm9, 1.0, %v2311_v22  ;;  %v1956_v17 = vsel %vm788_vm10, 1.0, %v2311_v22  ;;  %v1953_v20 = vsel %vm785_vm11, 1.0, %v2311_v22  ;;  %v1954_v21 = vsel %vm786_vm12, 1.0, %v2311_v22  ;;  %577 = vbcast.lane.b32.xlu1 %v2621_v27, 376  ;;  %573 = vbcast.lane.b32.xlu0 %v2621_v27, 368 }
 0x101   : > { %1555 = vst [vmem:[%s2484_s27 + $0x250] sm:$0xff] %v1955_v15  ;;  %1556 = vst [vmem:[%s2484_s27 + $0x258] sm:$0xff] %v1956_v17 }
 0x102   : > { %1553 = vst [vmem:[%s2484_s27 + $0x240] sm:$0xff] %v1953_v20  ;;  %1554 = vst [vmem:[%s2484_s27 + $0x248] sm:$0xff] %v1954_v21  ;;  %v345_v12 = vpop.permute.xlu1 %344  ;;  %v341_v23 = vpop.permute.xlu0 %340 }
 0x103   : > { %vm791_vm13 = vcmp.eq.s32.totalorder %v345_v12, %v2470_v18  ;;  %vm792_vm14 = vcmp.eq.s32.totalorder %v345_v12, %v2474_v19  ;;  %vm789_vm15 = vcmp.eq.s32.totalorder %v341_v23, %v2470_v18  ;;  %vm790_vm0 = vcmp.eq.s32.totalorder %v341_v23, %v2474_v19 }
 0x104   : > { %v1959_v24 = vsel %vm791_vm13, 1.0, %v2311_v22  ;;  %v1960_v25 = vsel %vm792_vm14, 1.0, %v2311_v22  ;;  %v1957_v26 = vsel %vm789_vm15, 1.0, %v2311_v22  ;;  %v1958_v27 = vsel %vm790_vm0, 1.0, %v2311_v22  ;;  %588 = vbcast.lane.b32.xlu1 %v2737_v13, 264  ;;  %584 = vbcast.lane.b32.xlu0 %v2737_v13, 256 }
 0x105   : > { %1559 = vst [vmem:[%s2484_s27 + $0x270] sm:$0xff] %v1959_v24  ;;  %1560 = vst [vmem:[%s2484_s27 + $0x278] sm:$0xff] %v1960_v25 }
 0x106   : > { %1557 = vst [vmem:[%s2484_s27 + $0x260] sm:$0xff] %v1957_v26  ;;  %1558 = vst [vmem:[%s2484_s27 + $0x268] sm:$0xff] %v1958_v27  ;;  %v353_v28 = vpop.permute.xlu1 %352  ;;  %v349_v30 = vpop.permute.xlu0 %348 }
 0x107   : > { %vm795_vm1 = vcmp.eq.s32.totalorder %v353_v28, %v2470_v18  ;;  %vm796_vm2 = vcmp.eq.s32.totalorder %v353_v28, %v2474_v19  ;;  %vm793_vm3 = vcmp.eq.s32.totalorder %v349_v30, %v2470_v18  ;;  %vm794_vm4 = vcmp.eq.s32.totalorder %v349_v30, %v2474_v19 }
 0x108   : > { %v1963_v31 = vsel %vm795_vm1, 1.0, %v2311_v22  ;;  %v1964_v32 = vsel %vm796_vm2, 1.0, %v2311_v22  ;;  %v1961_v14 = vsel %vm793_vm3, 1.0, %v2311_v22  ;;  %v1962_v33 = vsel %vm794_vm4, 1.0, %v2311_v22  ;;  %596 = vbcast.lane.b32.xlu1 %v2737_v13, 280  ;;  %592 = vbcast.lane.b32.xlu0 %v2737_v13, 272 }
 0x109   : > { %1563 = vst [vmem:[%s2484_s27 + $0x290] sm:$0xff] %v1963_v31  ;;  %1564 = vst [vmem:[%s2484_s27 + $0x298] sm:$0xff] %v1964_v32 }
 0x10a   : > { %1561 = vst [vmem:[%s2484_s27 + $0x280] sm:$0xff] %v1961_v14  ;;  %1562 = vst [vmem:[%s2484_s27 + $0x288] sm:$0xff] %v1962_v33  ;;  %v361_v34 = vpop.permute.xlu1 %360  ;;  %v357_v35 = vpop.permute.xlu0 %356 }
 0x10b   : > { %vm799_vm5 = vcmp.eq.s32.totalorder %v361_v34, %v2470_v18  ;;  %vm800_vm6 = vcmp.eq.s32.totalorder %v361_v34, %v2474_v19  ;;  %vm797_vm7 = vcmp.eq.s32.totalorder %v357_v35, %v2470_v18  ;;  %vm798_vm8 = vcmp.eq.s32.totalorder %v357_v35, %v2474_v19 }
 0x10c   : > { %v1967_v36 = vsel %vm799_vm5, 1.0, %v2311_v22  ;;  %v1968_v37 = vsel %vm800_vm6, 1.0, %v2311_v22  ;;  %v1965_v38 = vsel %vm797_vm7, 1.0, %v2311_v22  ;;  %v1966_v39 = vsel %vm798_vm8, 1.0, %v2311_v22  ;;  %604 = vbcast.lane.b32.xlu1 %v2737_v13, 296  ;;  %600 = vbcast.lane.b32.xlu0 %v2737_v13, 288 }
 0x10d   : > { %1567 = vst [vmem:[%s2484_s27 + $0x2b0] sm:$0xff] %v1967_v36  ;;  %1568 = vst [vmem:[%s2484_s27 + $0x2b8] sm:$0xff] %v1968_v37 }
 0x10e   : > { %1565 = vst [vmem:[%s2484_s27 + $0x2a0] sm:$0xff] %v1965_v38  ;;  %1566 = vst [vmem:[%s2484_s27 + $0x2a8] sm:$0xff] %v1966_v39  ;;  %v369_v40 = vpop.permute.xlu1 %368  ;;  %v365_v41 = vpop.permute.xlu0 %364 }
 0x10f   : > { %vm803_vm9 = vcmp.eq.s32.totalorder %v369_v40, %v2470_v18  ;;  %vm804_vm10 = vcmp.eq.s32.totalorder %v369_v40, %v2474_v19  ;;  %vm801_vm11 = vcmp.eq.s32.totalorder %v365_v41, %v2470_v18  ;;  %vm802_vm12 = vcmp.eq.s32.totalorder %v365_v41, %v2474_v19 }
 0x110   : > { %v1971_v42 = vsel %vm803_vm9, 1.0, %v2311_v22  ;;  %v1972_v43 = vsel %vm804_vm10, 1.0, %v2311_v22  ;;  %v1969_v44 = vsel %vm801_vm11, 1.0, %v2311_v22  ;;  %v1970_v45 = vsel %vm802_vm12, 1.0, %v2311_v22  ;;  %612 = vbcast.lane.b32.xlu1 %v2737_v13, 312  ;;  %608 = vbcast.lane.b32.xlu0 %v2737_v13, 304 }
 0x111   : > { %1571 = vst [vmem:[%s2484_s27 + $0x2d0] sm:$0xff] %v1971_v42  ;;  %1572 = vst [vmem:[%s2484_s27 + $0x2d8] sm:$0xff] %v1972_v43 }
 0x112   : > { %1569 = vst [vmem:[%s2484_s27 + $0x2c0] sm:$0xff] %v1969_v44  ;;  %1570 = vst [vmem:[%s2484_s27 + $0x2c8] sm:$0xff] %v1970_v45  ;;  %v377_v46 = vpop.permute.xlu1 %376  ;;  %v373_v47 = vpop.permute.xlu0 %372 }
 0x113   : > { %vm807_vm13 = vcmp.eq.s32.totalorder %v377_v46, %v2470_v18  ;;  %vm808_vm14 = vcmp.eq.s32.totalorder %v377_v46, %v2474_v19  ;;  %vm805_vm15 = vcmp.eq.s32.totalorder %v373_v47, %v2470_v18  ;;  %vm806_vm0 = vcmp.eq.s32.totalorder %v373_v47, %v2474_v19 }
 0x114   : > { %v1975_v48 = vsel %vm807_vm13, 1.0, %v2311_v22  ;;  %v1976_v49 = vsel %vm808_vm14, 1.0, %v2311_v22  ;;  %v1973_v50 = vsel %vm805_vm15, 1.0, %v2311_v22  ;;  %v1974_v51 = vsel %vm806_vm0, 1.0, %v2311_v22  ;;  %620 = vbcast.lane.b32.xlu1 %v2737_v13, 328  ;;  %616 = vbcast.lane.b32.xlu0 %v2737_v13, 320 }
 0x115   : > { %1575 = vst [vmem:[%s2484_s27 + $0x2f0] sm:$0xff] %v1975_v48  ;;  %1576 = vst [vmem:[%s2484_s27 + $0x2f8] sm:$0xff] %v1976_v49 }
 0x116   : > { %1573 = vst [vmem:[%s2484_s27 + $0x2e0] sm:$0xff] %v1973_v50  ;;  %1574 = vst [vmem:[%s2484_s27 + $0x2e8] sm:$0xff] %v1974_v51  ;;  %v388_v52 = vpop.permute.xlu1 %387  ;;  %v384_v53 = vpop.permute.xlu0 %383 }
 0x117   : > { %vm811_vm1 = vcmp.eq.s32.totalorder %v388_v52, %v2470_v18  ;;  %vm812_vm2 = vcmp.eq.s32.totalorder %v388_v52, %v2474_v19  ;;  %vm809_vm3 = vcmp.eq.s32.totalorder %v384_v53, %v2470_v18  ;;  %vm810_vm4 = vcmp.eq.s32.totalorder %v384_v53, %v2474_v19 }
 0x118   : > { %v1979_v54 = vsel %vm811_vm1, 1.0, %v2311_v22  ;;  %v1980_v55 = vsel %vm812_vm2, 1.0, %v2311_v22  ;;  %v1977_v56 = vsel %vm809_vm3, 1.0, %v2311_v22  ;;  %v1978_v57 = vsel %vm810_vm4, 1.0, %v2311_v22  ;;  %628 = vbcast.lane.b32.xlu1 %v2737_v13, 344  ;;  %624 = vbcast.lane.b32.xlu0 %v2737_v13, 336 }
 0x119   : > { %1579 = vst [vmem:[%s2484_s27 + $0x310] sm:$0xff] %v1979_v54  ;;  %1580 = vst [vmem:[%s2484_s27 + $0x318] sm:$0xff] %v1980_v55 }
 0x11a   : > { %1577 = vst [vmem:[%s2484_s27 + $0x300] sm:$0xff] %v1977_v56  ;;  %1578 = vst [vmem:[%s2484_s27 + $0x308] sm:$0xff] %v1978_v57  ;;  %v396_v58 = vpop.permute.xlu1 %395  ;;  %v392_v59 = vpop.permute.xlu0 %391 }
 0x11b   : > { %vm815_vm5 = vcmp.eq.s32.totalorder %v396_v58, %v2470_v18  ;;  %vm816_vm6 = vcmp.eq.s32.totalorder %v396_v58, %v2474_v19  ;;  %vm813_vm7 = vcmp.eq.s32.totalorder %v392_v59, %v2470_v18  ;;  %vm814_vm8 = vcmp.eq.s32.totalorder %v392_v59, %v2474_v19 }
 0x11c   : > { %v1983_v60 = vsel %vm815_vm5, 1.0, %v2311_v22  ;;  %v1984_v61 = vsel %vm816_vm6, 1.0, %v2311_v22  ;;  %v1981_v62 = vsel %vm813_vm7, 1.0, %v2311_v22  ;;  %v1982_v63 = vsel %vm814_vm8, 1.0, %v2311_v22  ;;  %636 = vbcast.lane.b32.xlu1 %v2737_v13, 360  ;;  %632 = vbcast.lane.b32.xlu0 %v2737_v13, 352 }
 0x11d   : > { %1583 = vst [vmem:[%s2484_s27 + $0x330] sm:$0xff] %v1983_v60  ;;  %1584 = vst [vmem:[%s2484_s27 + $0x338] sm:$0xff] %v1984_v61 }
 0x11e   : > { %1581 = vst [vmem:[%s2484_s27 + $0x320] sm:$0xff] %v1981_v62  ;;  %1582 = vst [vmem:[%s2484_s27 + $0x328] sm:$0xff] %v1982_v63  ;;  %v404_v0 = vpop.permute.xlu1 %403  ;;  %v400_v1 = vpop.permute.xlu0 %399 }
 0x11f   : > { %vm819_vm9 = vcmp.eq.s32.totalorder %v404_v0, %v2470_v18  ;;  %vm820_vm10 = vcmp.eq.s32.totalorder %v404_v0, %v2474_v19  ;;  %vm817_vm11 = vcmp.eq.s32.totalorder %v400_v1, %v2470_v18  ;;  %vm818_vm12 = vcmp.eq.s32.totalorder %v400_v1, %v2474_v19 }
 0x120   : > { %v1987_v3 = vsel %vm819_vm9, 1.0, %v2311_v22  ;;  %v1988_v4 = vsel %vm820_vm10, 1.0, %v2311_v22  ;;  %v1985_v5 = vsel %vm817_vm11, 1.0, %v2311_v22  ;;  %v1986_v6 = vsel %vm818_vm12, 1.0, %v2311_v22  ;;  %644 = vbcast.lane.b32.xlu1 %v2737_v13, 376  ;;  %640 = vbcast.lane.b32.xlu0 %v2737_v13, 368 }
 0x121   : > { %1587 = vst [vmem:[%s2484_s27 + $0x350] sm:$0xff] %v1987_v3  ;;  %1588 = vst [vmem:[%s2484_s27 + $0x358] sm:$0xff] %v1988_v4 }
 0x122   : > { %1585 = vst [vmem:[%s2484_s27 + $0x340] sm:$0xff] %v1985_v5  ;;  %1586 = vst [vmem:[%s2484_s27 + $0x348] sm:$0xff] %v1986_v6  ;;  %v412_v16 = vpop.permute.xlu1 %411  ;;  %v408_v29 = vpop.permute.xlu0 %407 }
 0x123   : > { %vm823_vm13 = vcmp.eq.s32.totalorder %v412_v16, %v2470_v18  ;;  %vm824_vm14 = vcmp.eq.s32.totalorder %v412_v16, %v2474_v19  ;;  %vm821_vm15 = vcmp.eq.s32.totalorder %v408_v29, %v2470_v18  ;;  %vm822_vm0 = vcmp.eq.s32.totalorder %v408_v29, %v2474_v19 }
 0x124   : > { %v1991_v7 = vsel %vm823_vm13, 1.0, %v2311_v22  ;;  %v1992_v8 = vsel %vm824_vm14, 1.0, %v2311_v22  ;;  %v1989_v9 = vsel %vm821_vm15, 1.0, %v2311_v22  ;;  %v1990_v10 = vsel %vm822_vm0, 1.0, %v2311_v22  ;;  %655 = vbcast.lane.b32.xlu1 %v2853_v2, 264  ;;  %651 = vbcast.lane.b32.xlu0 %v2853_v2, 256 }
 0x125   : > { %1591 = vst [vmem:[%s2484_s27 + $0x370] sm:$0xff] %v1991_v7  ;;  %1592 = vst [vmem:[%s2484_s27 + $0x378] sm:$0xff] %v1992_v8 }
 0x126   : > { %1589 = vst [vmem:[%s2484_s27 + $0x360] sm:$0xff] %v1989_v9  ;;  %1590 = vst [vmem:[%s2484_s27 + $0x368] sm:$0xff] %v1990_v10  ;;  %v420_v11 = vpop.permute.xlu1 %419  ;;  %v416_v13 = vpop.permute.xlu0 %415 }
 0x127   : > { %vm827_vm1 = vcmp.eq.s32.totalorder %v420_v11, %v2470_v18  ;;  %vm828_vm2 = vcmp.eq.s32.totalorder %v420_v11, %v2474_v19  ;;  %vm825_vm3 = vcmp.eq.s32.totalorder %v416_v13, %v2470_v18  ;;  %vm826_vm4 = vcmp.eq.s32.totalorder %v416_v13, %v2474_v19 }
 0x128   : > { %v1995_v15 = vsel %vm827_vm1, 1.0, %v2311_v22  ;;  %v1996_v17 = vsel %vm828_vm2, 1.0, %v2311_v22  ;;  %v1993_v20 = vsel %vm825_vm3, 1.0, %v2311_v22  ;;  %v1994_v21 = vsel %vm826_vm4, 1.0, %v2311_v22  ;;  %663 = vbcast.lane.b32.xlu1 %v2853_v2, 280  ;;  %659 = vbcast.lane.b32.xlu0 %v2853_v2, 272 }
 0x129   : > { %1595 = vst [vmem:[%s2484_s27 + $0x390] sm:$0xff] %v1995_v15  ;;  %1596 = vst [vmem:[%s2484_s27 + $0x398] sm:$0xff] %v1996_v17 }
 0x12a   : > { %1593 = vst [vmem:[%s2484_s27 + $0x380] sm:$0xff] %v1993_v20  ;;  %1594 = vst [vmem:[%s2484_s27 + $0x388] sm:$0xff] %v1994_v21  ;;  %v428_v12 = vpop.permute.xlu1 %427  ;;  %v424_v23 = vpop.permute.xlu0 %423 }
 0x12b   : > { %vm831_vm5 = vcmp.eq.s32.totalorder %v428_v12, %v2470_v18  ;;  %vm832_vm6 = vcmp.eq.s32.totalorder %v428_v12, %v2474_v19  ;;  %vm829_vm7 = vcmp.eq.s32.totalorder %v424_v23, %v2470_v18  ;;  %vm830_vm8 = vcmp.eq.s32.totalorder %v424_v23, %v2474_v19 }
 0x12c   : > { %v1999_v24 = vsel %vm831_vm5, 1.0, %v2311_v22  ;;  %v2000_v25 = vsel %vm832_vm6, 1.0, %v2311_v22  ;;  %v1997_v26 = vsel %vm829_vm7, 1.0, %v2311_v22  ;;  %v1998_v27 = vsel %vm830_vm8, 1.0, %v2311_v22  ;;  %671 = vbcast.lane.b32.xlu1 %v2853_v2, 296  ;;  %667 = vbcast.lane.b32.xlu0 %v2853_v2, 288 }
 0x12d   : > { %1599 = vst [vmem:[%s2484_s27 + $0x3b0] sm:$0xff] %v1999_v24  ;;  %1600 = vst [vmem:[%s2484_s27 + $0x3b8] sm:$0xff] %v2000_v25 }
 0x12e   : > { %1597 = vst [vmem:[%s2484_s27 + $0x3a0] sm:$0xff] %v1997_v26  ;;  %1598 = vst [vmem:[%s2484_s27 + $0x3a8] sm:$0xff] %v1998_v27  ;;  %v436_v28 = vpop.permute.xlu1 %435  ;;  %v432_v30 = vpop.permute.xlu0 %431 }
 0x12f   : > { %vm835_vm9 = vcmp.eq.s32.totalorder %v436_v28, %v2470_v18  ;;  %vm836_vm10 = vcmp.eq.s32.totalorder %v436_v28, %v2474_v19  ;;  %vm833_vm11 = vcmp.eq.s32.totalorder %v432_v30, %v2470_v18  ;;  %vm834_vm12 = vcmp.eq.s32.totalorder %v432_v30, %v2474_v19 }
 0x130   : > { %v2003_v31 = vsel %vm835_vm9, 1.0, %v2311_v22  ;;  %v2004_v32 = vsel %vm836_vm10, 1.0, %v2311_v22  ;;  %v2001_v14 = vsel %vm833_vm11, 1.0, %v2311_v22  ;;  %v2002_v33 = vsel %vm834_vm12, 1.0, %v2311_v22  ;;  %679 = vbcast.lane.b32.xlu1 %v2853_v2, 312  ;;  %675 = vbcast.lane.b32.xlu0 %v2853_v2, 304 }
 0x131   : > { %1603 = vst [vmem:[%s2484_s27 + $0x3d0] sm:$0xff] %v2003_v31  ;;  %1604 = vst [vmem:[%s2484_s27 + $0x3d8] sm:$0xff] %v2004_v32 }
 0x132   : > { %1601 = vst [vmem:[%s2484_s27 + $0x3c0] sm:$0xff] %v2001_v14  ;;  %1602 = vst [vmem:[%s2484_s27 + $0x3c8] sm:$0xff] %v2002_v33  ;;  %v444_v34 = vpop.permute.xlu1 %443  ;;  %v440_v35 = vpop.permute.xlu0 %439 }
 0x133   : > { %vm839_vm13 = vcmp.eq.s32.totalorder %v444_v34, %v2470_v18  ;;  %vm840_vm14 = vcmp.eq.s32.totalorder %v444_v34, %v2474_v19  ;;  %vm837_vm15 = vcmp.eq.s32.totalorder %v440_v35, %v2470_v18  ;;  %vm838_vm0 = vcmp.eq.s32.totalorder %v440_v35, %v2474_v19 }
 0x134   : > { %v2007_v36 = vsel %vm839_vm13, 1.0, %v2311_v22  ;;  %v2008_v37 = vsel %vm840_vm14, 1.0, %v2311_v22  ;;  %v2005_v38 = vsel %vm837_vm15, 1.0, %v2311_v22  ;;  %v2006_v39 = vsel %vm838_vm0, 1.0, %v2311_v22  ;;  %687 = vbcast.lane.b32.xlu1 %v2853_v2, 328  ;;  %683 = vbcast.lane.b32.xlu0 %v2853_v2, 320 }
 0x135   : > { %1607 = vst [vmem:[%s2484_s27 + $0x3f0] sm:$0xff] %v2007_v36  ;;  %1608 = vst [vmem:[%s2484_s27 + $0x3f8] sm:$0xff] %v2008_v37 }
 0x136   : > { %1605 = vst [vmem:[%s2484_s27 + $0x3e0] sm:$0xff] %v2005_v38  ;;  %1606 = vst [vmem:[%s2484_s27 + $0x3e8] sm:$0xff] %v2006_v39  ;;  %v455_v40 = vpop.permute.xlu1 %454  ;;  %v451_v41 = vpop.permute.xlu0 %450 }
 0x137   : > { %vm843_vm1 = vcmp.eq.s32.totalorder %v455_v40, %v2470_v18  ;;  %vm844_vm2 = vcmp.eq.s32.totalorder %v455_v40, %v2474_v19  ;;  %vm841_vm3 = vcmp.eq.s32.totalorder %v451_v41, %v2470_v18  ;;  %vm842_vm4 = vcmp.eq.s32.totalorder %v451_v41, %v2474_v19 }
 0x138   : > { %v2011_v42 = vsel %vm843_vm1, 1.0, %v2311_v22  ;;  %v2012_v43 = vsel %vm844_vm2, 1.0, %v2311_v22  ;;  %v2009_v44 = vsel %vm841_vm3, 1.0, %v2311_v22  ;;  %v2010_v45 = vsel %vm842_vm4, 1.0, %v2311_v22  ;;  %695 = vbcast.lane.b32.xlu1 %v2853_v2, 344  ;;  %691 = vbcast.lane.b32.xlu0 %v2853_v2, 336 }
 0x139   : > { %1611 = vst [vmem:[%s2484_s27 + $0x410] sm:$0xff] %v2011_v42  ;;  %1612 = vst [vmem:[%s2484_s27 + $0x418] sm:$0xff] %v2012_v43 }
 0x13a   : > { %1609 = vst [vmem:[%s2484_s27 + $0x400] sm:$0xff] %v2009_v44  ;;  %1610 = vst [vmem:[%s2484_s27 + $0x408] sm:$0xff] %v2010_v45  ;;  %v463_v46 = vpop.permute.xlu1 %462  ;;  %v459_v47 = vpop.permute.xlu0 %458 }
 0x13b   : > { %vm847_vm5 = vcmp.eq.s32.totalorder %v463_v46, %v2470_v18  ;;  %vm848_vm6 = vcmp.eq.s32.totalorder %v463_v46, %v2474_v19  ;;  %vm845_vm7 = vcmp.eq.s32.totalorder %v459_v47, %v2470_v18  ;;  %vm846_vm8 = vcmp.eq.s32.totalorder %v459_v47, %v2474_v19 }
 0x13c   : > { %v2015_v48 = vsel %vm847_vm5, 1.0, %v2311_v22  ;;  %v2016_v49 = vsel %vm848_vm6, 1.0, %v2311_v22  ;;  %v2013_v50 = vsel %vm845_vm7, 1.0, %v2311_v22  ;;  %v2014_v51 = vsel %vm846_vm8, 1.0, %v2311_v22  ;;  %703 = vbcast.lane.b32.xlu1 %v2853_v2, 360  ;;  %699 = vbcast.lane.b32.xlu0 %v2853_v2, 352 }
 0x13d   : > { %1615 = vst [vmem:[%s2484_s27 + $0x430] sm:$0xff] %v2015_v48  ;;  %1616 = vst [vmem:[%s2484_s27 + $0x438] sm:$0xff] %v2016_v49 }
 0x13e   : > { %1613 = vst [vmem:[%s2484_s27 + $0x420] sm:$0xff] %v2013_v50  ;;  %1614 = vst [vmem:[%s2484_s27 + $0x428] sm:$0xff] %v2014_v51  ;;  %v471_v52 = vpop.permute.xlu1 %470  ;;  %v467_v53 = vpop.permute.xlu0 %466 }
 0x13f   : > { %vm851_vm9 = vcmp.eq.s32.totalorder %v471_v52, %v2470_v18  ;;  %vm852_vm10 = vcmp.eq.s32.totalorder %v471_v52, %v2474_v19  ;;  %vm849_vm11 = vcmp.eq.s32.totalorder %v467_v53, %v2470_v18  ;;  %vm850_vm12 = vcmp.eq.s32.totalorder %v467_v53, %v2474_v19 }
 0x140   : > { %v2019_v54 = vsel %vm851_vm9, 1.0, %v2311_v22  ;;  %v2020_v55 = vsel %vm852_vm10, 1.0, %v2311_v22  ;;  %v2017_v56 = vsel %vm849_vm11, 1.0, %v2311_v22  ;;  %v2018_v57 = vsel %vm850_vm12, 1.0, %v2311_v22  ;;  %711 = vbcast.lane.b32.xlu1 %v2853_v2, 376  ;;  %707 = vbcast.lane.b32.xlu0 %v2853_v2, 368 }
 0x141   : > { %1619 = vst [vmem:[%s2484_s27 + $0x450] sm:$0xff] %v2019_v54  ;;  %1620 = vst [vmem:[%s2484_s27 + $0x458] sm:$0xff] %v2020_v55 }
 0x142   : > { %1617 = vst [vmem:[%s2484_s27 + $0x440] sm:$0xff] %v2017_v56  ;;  %1618 = vst [vmem:[%s2484_s27 + $0x448] sm:$0xff] %v2018_v57  ;;  %v479_v58 = vpop.permute.xlu1 %478  ;;  %v475_v59 = vpop.permute.xlu0 %474 }
 0x143   : > { %vm855_vm13 = vcmp.eq.s32.totalorder %v479_v58, %v2470_v18  ;;  %vm856_vm14 = vcmp.eq.s32.totalorder %v479_v58, %v2474_v19  ;;  %vm853_vm15 = vcmp.eq.s32.totalorder %v475_v59, %v2470_v18  ;;  %vm854_vm0 = vcmp.eq.s32.totalorder %v475_v59, %v2474_v19 }
 0x144   : > { %v2023_v60 = vsel %vm855_vm13, 1.0, %v2311_v22  ;;  %v2024_v61 = vsel %vm856_vm14, 1.0, %v2311_v22  ;;  %v2021_v62 = vsel %vm853_vm15, 1.0, %v2311_v22  ;;  %v2022_v63 = vsel %vm854_vm0, 1.0, %v2311_v22 }
 0x145   : > { %1623 = vst [vmem:[%s2484_s27 + $0x470] sm:$0xff] %v2023_v60  ;;  %1624 = vst [vmem:[%s2484_s27 + $0x478] sm:$0xff] %v2024_v61 }
 0x146   : > { %1621 = vst [vmem:[%s2484_s27 + $0x460] sm:$0xff] %v2021_v62  ;;  %1622 = vst [vmem:[%s2484_s27 + $0x468] sm:$0xff] %v2022_v63  ;;  %v487_v0 = vpop.permute.xlu1 %486  ;;  %v483_v1 = vpop.permute.xlu0 %482 }
 0x147   : > { %vm859_vm1 = vcmp.eq.s32.totalorder %v487_v0, %v2470_v18  ;;  %vm860_vm2 = vcmp.eq.s32.totalorder %v487_v0, %v2474_v19  ;;  %vm857_vm3 = vcmp.eq.s32.totalorder %v483_v1, %v2470_v18  ;;  %vm858_vm4 = vcmp.eq.s32.totalorder %v483_v1, %v2474_v19 }
 0x148   : > { %v2027_v2 = vsel %vm859_vm1, 1.0, %v2311_v22  ;;  %v2028_v3 = vsel %vm860_vm2, 1.0, %v2311_v22  ;;  %v2025_v4 = vsel %vm857_vm3, 1.0, %v2311_v22  ;;  %v2026_v5 = vsel %vm858_vm4, 1.0, %v2311_v22 }
 0x149   : > { %1627 = vst [vmem:[%s2484_s27 + $0x490] sm:$0xff] %v2027_v2  ;;  %1628 = vst [vmem:[%s2484_s27 + $0x498] sm:$0xff] %v2028_v3 }
 0x14a   : > { %1625 = vst [vmem:[%s2484_s27 + $0x480] sm:$0xff] %v2025_v4  ;;  %1626 = vst [vmem:[%s2484_s27 + $0x488] sm:$0xff] %v2026_v5  ;;  %v495_v6 = vpop.permute.xlu1 %494  ;;  %v491_v16 = vpop.permute.xlu0 %490 }
 0x14b   : > { %vm863_vm5 = vcmp.eq.s32.totalorder %v495_v6, %v2470_v18  ;;  %vm864_vm6 = vcmp.eq.s32.totalorder %v495_v6, %v2474_v19  ;;  %vm861_vm7 = vcmp.eq.s32.totalorder %v491_v16, %v2470_v18  ;;  %vm862_vm8 = vcmp.eq.s32.totalorder %v491_v16, %v2474_v19 }
 0x14c   : > { %v2031_v29 = vsel %vm863_vm5, 1.0, %v2311_v22  ;;  %v2032_v7 = vsel %vm864_vm6, 1.0, %v2311_v22  ;;  %v2029_v8 = vsel %vm861_vm7, 1.0, %v2311_v22  ;;  %v2030_v9 = vsel %vm862_vm8, 1.0, %v2311_v22 }
 0x14d   : > { %1631 = vst [vmem:[%s2484_s27 + $0x4b0] sm:$0xff] %v2031_v29  ;;  %1632 = vst [vmem:[%s2484_s27 + $0x4b8] sm:$0xff] %v2032_v7 }
 0x14e   : > { %1629 = vst [vmem:[%s2484_s27 + $0x4a0] sm:$0xff] %v2029_v8  ;;  %1630 = vst [vmem:[%s2484_s27 + $0x4a8] sm:$0xff] %v2030_v9  ;;  %v503_v10 = vpop.permute.xlu1 %502  ;;  %v499_v11 = vpop.permute.xlu0 %498 }
 0x14f   : > { %vm867_vm9 = vcmp.eq.s32.totalorder %v503_v10, %v2470_v18  ;;  %vm868_vm10 = vcmp.eq.s32.totalorder %v503_v10, %v2474_v19  ;;  %vm865_vm11 = vcmp.eq.s32.totalorder %v499_v11, %v2470_v18  ;;  %vm866_vm12 = vcmp.eq.s32.totalorder %v499_v11, %v2474_v19 }
 0x150   : > { %v2035_v13 = vsel %vm867_vm9, 1.0, %v2311_v22  ;;  %v2036_v15 = vsel %vm868_vm10, 1.0, %v2311_v22  ;;  %v2033_v17 = vsel %vm865_vm11, 1.0, %v2311_v22  ;;  %v2034_v20 = vsel %vm866_vm12, 1.0, %v2311_v22 }
 0x151   : > { %1635 = vst [vmem:[%s2484_s27 + $0x4d0] sm:$0xff] %v2035_v13  ;;  %1636 = vst [vmem:[%s2484_s27 + $0x4d8] sm:$0xff] %v2036_v15 }
 0x152   : > { %1633 = vst [vmem:[%s2484_s27 + $0x4c0] sm:$0xff] %v2033_v17  ;;  %1634 = vst [vmem:[%s2484_s27 + $0x4c8] sm:$0xff] %v2034_v20  ;;  %v511_v21 = vpop.permute.xlu1 %510  ;;  %v507_v12 = vpop.permute.xlu0 %506 }
 0x153   : > { %vm871_vm13 = vcmp.eq.s32.totalorder %v511_v21, %v2470_v18  ;;  %vm872_vm14 = vcmp.eq.s32.totalorder %v511_v21, %v2474_v19  ;;  %vm869_vm15 = vcmp.eq.s32.totalorder %v507_v12, %v2470_v18  ;;  %vm870_vm0 = vcmp.eq.s32.totalorder %v507_v12, %v2474_v19 }
 0x154   : > { %v2039_v23 = vsel %vm871_vm13, 1.0, %v2311_v22  ;;  %v2040_v24 = vsel %vm872_vm14, 1.0, %v2311_v22  ;;  %v2037_v25 = vsel %vm869_vm15, 1.0, %v2311_v22  ;;  %v2038_v26 = vsel %vm870_vm0, 1.0, %v2311_v22 }
 0x155   : > { %1639 = vst [vmem:[%s2484_s27 + $0x4f0] sm:$0xff] %v2039_v23  ;;  %1640 = vst [vmem:[%s2484_s27 + $0x4f8] sm:$0xff] %v2040_v24 }
 0x156   : > { %1637 = vst [vmem:[%s2484_s27 + $0x4e0] sm:$0xff] %v2037_v25  ;;  %1638 = vst [vmem:[%s2484_s27 + $0x4e8] sm:$0xff] %v2038_v26  ;;  %v522_v27 = vpop.permute.xlu1 %521  ;;  %v518_v28 = vpop.permute.xlu0 %517 }
 0x157   : > { %vm875_vm1 = vcmp.eq.s32.totalorder %v522_v27, %v2470_v18  ;;  %vm876_vm2 = vcmp.eq.s32.totalorder %v522_v27, %v2474_v19  ;;  %vm873_vm3 = vcmp.eq.s32.totalorder %v518_v28, %v2470_v18  ;;  %vm874_vm4 = vcmp.eq.s32.totalorder %v518_v28, %v2474_v19 }
 0x158   : > { %v2043_v30 = vsel %vm875_vm1, 1.0, %v2311_v22  ;;  %v2044_v31 = vsel %vm876_vm2, 1.0, %v2311_v22  ;;  %v2041_v32 = vsel %vm873_vm3, 1.0, %v2311_v22  ;;  %v2042_v14 = vsel %vm874_vm4, 1.0, %v2311_v22 }
 0x159   : > { %1643 = vst [vmem:[%s2484_s27 + $0x510] sm:$0xff] %v2043_v30  ;;  %1644 = vst [vmem:[%s2484_s27 + $0x518] sm:$0xff] %v2044_v31 }
 0x15a   : > { %1641 = vst [vmem:[%s2484_s27 + $0x500] sm:$0xff] %v2041_v32  ;;  %1642 = vst [vmem:[%s2484_s27 + $0x508] sm:$0xff] %v2042_v14  ;;  %v530_v33 = vpop.permute.xlu1 %529  ;;  %v526_v34 = vpop.permute.xlu0 %525 }
 0x15b   : > { %vm879_vm5 = vcmp.eq.s32.totalorder %v530_v33, %v2470_v18  ;;  %vm880_vm6 = vcmp.eq.s32.totalorder %v530_v33, %v2474_v19  ;;  %vm877_vm7 = vcmp.eq.s32.totalorder %v526_v34, %v2470_v18  ;;  %vm878_vm8 = vcmp.eq.s32.totalorder %v526_v34, %v2474_v19 }
 0x15c   : > { %v2047_v35 = vsel %vm879_vm5, 1.0, %v2311_v22  ;;  %v2048_v36 = vsel %vm880_vm6, 1.0, %v2311_v22  ;;  %v2045_v37 = vsel %vm877_vm7, 1.0, %v2311_v22  ;;  %v2046_v38 = vsel %vm878_vm8, 1.0, %v2311_v22 }
 0x15d   : > { %1647 = vst [vmem:[%s2484_s27 + $0x530] sm:$0xff] %v2047_v35  ;;  %1648 = vst [vmem:[%s2484_s27 + $0x538] sm:$0xff] %v2048_v36 }
 0x15e   : > { %1645 = vst [vmem:[%s2484_s27 + $0x520] sm:$0xff] %v2045_v37  ;;  %1646 = vst [vmem:[%s2484_s27 + $0x528] sm:$0xff] %v2046_v38  ;;  %v538_v39 = vpop.permute.xlu1 %537  ;;  %v534_v40 = vpop.permute.xlu0 %533 }
 0x15f   : > { %vm883_vm9 = vcmp.eq.s32.totalorder %v538_v39, %v2470_v18  ;;  %vm884_vm10 = vcmp.eq.s32.totalorder %v538_v39, %v2474_v19  ;;  %vm881_vm11 = vcmp.eq.s32.totalorder %v534_v40, %v2470_v18  ;;  %vm882_vm12 = vcmp.eq.s32.totalorder %v534_v40, %v2474_v19 }
 0x160   : > { %v2051_v41 = vsel %vm883_vm9, 1.0, %v2311_v22  ;;  %v2052_v42 = vsel %vm884_vm10, 1.0, %v2311_v22  ;;  %v2049_v43 = vsel %vm881_vm11, 1.0, %v2311_v22  ;;  %v2050_v44 = vsel %vm882_vm12, 1.0, %v2311_v22 }
 0x161   : > { %1651 = vst [vmem:[%s2484_s27 + $0x550] sm:$0xff] %v2051_v41  ;;  %1652 = vst [vmem:[%s2484_s27 + $0x558] sm:$0xff] %v2052_v42 }
 0x162   : > { %1649 = vst [vmem:[%s2484_s27 + $0x540] sm:$0xff] %v2049_v43  ;;  %1650 = vst [vmem:[%s2484_s27 + $0x548] sm:$0xff] %v2050_v44  ;;  %v546_v45 = vpop.permute.xlu1 %545  ;;  %v542_v46 = vpop.permute.xlu0 %541 }
 0x163   : > { %vm887_vm13 = vcmp.eq.s32.totalorder %v546_v45, %v2470_v18  ;;  %vm888_vm14 = vcmp.eq.s32.totalorder %v546_v45, %v2474_v19  ;;  %vm885_vm15 = vcmp.eq.s32.totalorder %v542_v46, %v2470_v18  ;;  %vm886_vm0 = vcmp.eq.s32.totalorder %v542_v46, %v2474_v19 }
 0x164   : > { %v2055_v47 = vsel %vm887_vm13, 1.0, %v2311_v22  ;;  %v2056_v48 = vsel %vm888_vm14, 1.0, %v2311_v22  ;;  %v2053_v49 = vsel %vm885_vm15, 1.0, %v2311_v22  ;;  %v2054_v50 = vsel %vm886_vm0, 1.0, %v2311_v22 }
 0x165   : > { %1655 = vst [vmem:[%s2484_s27 + $0x570] sm:$0xff] %v2055_v47  ;;  %1656 = vst [vmem:[%s2484_s27 + $0x578] sm:$0xff] %v2056_v48 }
 0x166   : > { %1653 = vst [vmem:[%s2484_s27 + $0x560] sm:$0xff] %v2053_v49  ;;  %1654 = vst [vmem:[%s2484_s27 + $0x568] sm:$0xff] %v2054_v50  ;;  %v554_v51 = vpop.permute.xlu1 %553  ;;  %v550_v52 = vpop.permute.xlu0 %549 }
 0x167   : > { %vm891_vm1 = vcmp.eq.s32.totalorder %v554_v51, %v2470_v18  ;;  %vm892_vm2 = vcmp.eq.s32.totalorder %v554_v51, %v2474_v19  ;;  %vm889_vm3 = vcmp.eq.s32.totalorder %v550_v52, %v2470_v18  ;;  %vm890_vm4 = vcmp.eq.s32.totalorder %v550_v52, %v2474_v19 }
 0x168   : > { %v2059_v53 = vsel %vm891_vm1, 1.0, %v2311_v22  ;;  %v2060_v54 = vsel %vm892_vm2, 1.0, %v2311_v22  ;;  %v2057_v55 = vsel %vm889_vm3, 1.0, %v2311_v22  ;;  %v2058_v56 = vsel %vm890_vm4, 1.0, %v2311_v22 }
 0x169   : > { %1659 = vst [vmem:[%s2484_s27 + $0x590] sm:$0xff] %v2059_v53  ;;  %1660 = vst [vmem:[%s2484_s27 + $0x598] sm:$0xff] %v2060_v54 }
 0x16a   : > { %1657 = vst [vmem:[%s2484_s27 + $0x580] sm:$0xff] %v2057_v55  ;;  %1658 = vst [vmem:[%s2484_s27 + $0x588] sm:$0xff] %v2058_v56  ;;  %v562_v57 = vpop.permute.xlu1 %561  ;;  %v558_v58 = vpop.permute.xlu0 %557 }
 0x16b   : > { %vm895_vm5 = vcmp.eq.s32.totalorder %v562_v57, %v2470_v18  ;;  %vm896_vm6 = vcmp.eq.s32.totalorder %v562_v57, %v2474_v19  ;;  %vm893_vm7 = vcmp.eq.s32.totalorder %v558_v58, %v2470_v18  ;;  %vm894_vm8 = vcmp.eq.s32.totalorder %v558_v58, %v2474_v19 }
 0x16c   : > { %v2063_v59 = vsel %vm895_vm5, 1.0, %v2311_v22  ;;  %v2064_v60 = vsel %vm896_vm6, 1.0, %v2311_v22  ;;  %v2061_v61 = vsel %vm893_vm7, 1.0, %v2311_v22  ;;  %v2062_v62 = vsel %vm894_vm8, 1.0, %v2311_v22 }
 0x16d   : > { %1663 = vst [vmem:[%s2484_s27 + $0x5b0] sm:$0xff] %v2063_v59  ;;  %1664 = vst [vmem:[%s2484_s27 + $0x5b8] sm:$0xff] %v2064_v60 }
 0x16e   : > { %1661 = vst [vmem:[%s2484_s27 + $0x5a0] sm:$0xff] %v2061_v61  ;;  %1662 = vst [vmem:[%s2484_s27 + $0x5a8] sm:$0xff] %v2062_v62  ;;  %v570_v63 = vpop.permute.xlu1 %569  ;;  %v566_v0 = vpop.permute.xlu0 %565 }
 0x16f   : > { %vm899_vm9 = vcmp.eq.s32.totalorder %v570_v63, %v2470_v18  ;;  %vm900_vm10 = vcmp.eq.s32.totalorder %v570_v63, %v2474_v19  ;;  %vm897_vm11 = vcmp.eq.s32.totalorder %v566_v0, %v2470_v18  ;;  %vm898_vm12 = vcmp.eq.s32.totalorder %v566_v0, %v2474_v19 }
 0x170   : > { %v2067_v1 = vsel %vm899_vm9, 1.0, %v2311_v22  ;;  %v2068_v2 = vsel %vm900_vm10, 1.0, %v2311_v22  ;;  %v2065_v3 = vsel %vm897_vm11, 1.0, %v2311_v22  ;;  %v2066_v4 = vsel %vm898_vm12, 1.0, %v2311_v22 }
 0x171   : > { %1667 = vst [vmem:[%s2484_s27 + $0x5d0] sm:$0xff] %v2067_v1  ;;  %1668 = vst [vmem:[%s2484_s27 + $0x5d8] sm:$0xff] %v2068_v2 }
 0x172   : > { %1665 = vst [vmem:[%s2484_s27 + $0x5c0] sm:$0xff] %v2065_v3  ;;  %1666 = vst [vmem:[%s2484_s27 + $0x5c8] sm:$0xff] %v2066_v4  ;;  %v578_v5 = vpop.permute.xlu1 %577  ;;  %v574_v6 = vpop.permute.xlu0 %573 }
 0x173   : > { %vm903_vm13 = vcmp.eq.s32.totalorder %v578_v5, %v2470_v18  ;;  %vm904_vm14 = vcmp.eq.s32.totalorder %v578_v5, %v2474_v19  ;;  %vm901_vm15 = vcmp.eq.s32.totalorder %v574_v6, %v2470_v18  ;;  %vm902_vm0 = vcmp.eq.s32.totalorder %v574_v6, %v2474_v19 }
 0x174   : > { %v2071_v16 = vsel %vm903_vm13, 1.0, %v2311_v22  ;;  %v2072_v29 = vsel %vm904_vm14, 1.0, %v2311_v22  ;;  %v2069_v7 = vsel %vm901_vm15, 1.0, %v2311_v22  ;;  %v2070_v8 = vsel %vm902_vm0, 1.0, %v2311_v22 }
 0x175   : > { %1671 = vst [vmem:[%s2484_s27 + $0x5f0] sm:$0xff] %v2071_v16  ;;  %1672 = vst [vmem:[%s2484_s27 + $0x5f8] sm:$0xff] %v2072_v29 }
 0x176   : > { %1669 = vst [vmem:[%s2484_s27 + $0x5e0] sm:$0xff] %v2069_v7  ;;  %1670 = vst [vmem:[%s2484_s27 + $0x5e8] sm:$0xff] %v2070_v8  ;;  %v589_v9 = vpop.permute.xlu1 %588  ;;  %v585_v10 = vpop.permute.xlu0 %584 }
 0x177   : > { %vm907_vm1 = vcmp.eq.s32.totalorder %v589_v9, %v2470_v18  ;;  %vm908_vm2 = vcmp.eq.s32.totalorder %v589_v9, %v2474_v19  ;;  %vm905_vm3 = vcmp.eq.s32.totalorder %v585_v10, %v2470_v18  ;;  %vm906_vm4 = vcmp.eq.s32.totalorder %v585_v10, %v2474_v19 }
 0x178   : > { %v2075_v11 = vsel %vm907_vm1, 1.0, %v2311_v22  ;;  %v2076_v13 = vsel %vm908_vm2, 1.0, %v2311_v22  ;;  %v2073_v15 = vsel %vm905_vm3, 1.0, %v2311_v22  ;;  %v2074_v17 = vsel %vm906_vm4, 1.0, %v2311_v22 }
 0x179   : > { %1675 = vst [vmem:[%s2484_s27 + $0x610] sm:$0xff] %v2075_v11  ;;  %1676 = vst [vmem:[%s2484_s27 + $0x618] sm:$0xff] %v2076_v13 }
 0x17a   : > { %1673 = vst [vmem:[%s2484_s27 + $0x600] sm:$0xff] %v2073_v15  ;;  %1674 = vst [vmem:[%s2484_s27 + $0x608] sm:$0xff] %v2074_v17  ;;  %v597_v20 = vpop.permute.xlu1 %596  ;;  %v593_v21 = vpop.permute.xlu0 %592 }
 0x17b   : > { %vm911_vm5 = vcmp.eq.s32.totalorder %v597_v20, %v2470_v18  ;;  %vm912_vm6 = vcmp.eq.s32.totalorder %v597_v20, %v2474_v19  ;;  %vm909_vm7 = vcmp.eq.s32.totalorder %v593_v21, %v2470_v18  ;;  %vm910_vm8 = vcmp.eq.s32.totalorder %v593_v21, %v2474_v19 }
 0x17c   : > { %v2079_v12 = vsel %vm911_vm5, 1.0, %v2311_v22  ;;  %v2080_v23 = vsel %vm912_vm6, 1.0, %v2311_v22  ;;  %v2077_v24 = vsel %vm909_vm7, 1.0, %v2311_v22  ;;  %v2078_v25 = vsel %vm910_vm8, 1.0, %v2311_v22 }
 0x17d   : > { %1679 = vst [vmem:[%s2484_s27 + $0x630] sm:$0xff] %v2079_v12  ;;  %1680 = vst [vmem:[%s2484_s27 + $0x638] sm:$0xff] %v2080_v23 }
 0x17e   : > { %1677 = vst [vmem:[%s2484_s27 + $0x620] sm:$0xff] %v2077_v24  ;;  %1678 = vst [vmem:[%s2484_s27 + $0x628] sm:$0xff] %v2078_v25  ;;  %v605_v26 = vpop.permute.xlu1 %604  ;;  %v601_v27 = vpop.permute.xlu0 %600 }
 0x17f   : > { %vm915_vm9 = vcmp.eq.s32.totalorder %v605_v26, %v2470_v18  ;;  %vm916_vm10 = vcmp.eq.s32.totalorder %v605_v26, %v2474_v19  ;;  %vm913_vm11 = vcmp.eq.s32.totalorder %v601_v27, %v2470_v18  ;;  %vm914_vm12 = vcmp.eq.s32.totalorder %v601_v27, %v2474_v19 }
 0x180   : > { %v2083_v28 = vsel %vm915_vm9, 1.0, %v2311_v22  ;;  %v2084_v30 = vsel %vm916_vm10, 1.0, %v2311_v22  ;;  %v2081_v31 = vsel %vm913_vm11, 1.0, %v2311_v22  ;;  %v2082_v32 = vsel %vm914_vm12, 1.0, %v2311_v22 }
 0x181   : > { %1683 = vst [vmem:[%s2484_s27 + $0x650] sm:$0xff] %v2083_v28  ;;  %1684 = vst [vmem:[%s2484_s27 + $0x658] sm:$0xff] %v2084_v30 }
 0x182   : > { %1681 = vst [vmem:[%s2484_s27 + $0x640] sm:$0xff] %v2081_v31  ;;  %1682 = vst [vmem:[%s2484_s27 + $0x648] sm:$0xff] %v2082_v32  ;;  %v613_v14 = vpop.permute.xlu1 %612  ;;  %v609_v33 = vpop.permute.xlu0 %608 }
 0x183   : > { %vm919_vm13 = vcmp.eq.s32.totalorder %v613_v14, %v2470_v18  ;;  %vm920_vm14 = vcmp.eq.s32.totalorder %v613_v14, %v2474_v19  ;;  %vm917_vm15 = vcmp.eq.s32.totalorder %v609_v33, %v2470_v18  ;;  %vm918_vm0 = vcmp.eq.s32.totalorder %v609_v33, %v2474_v19 }
 0x184   : > { %v2087_v34 = vsel %vm919_vm13, 1.0, %v2311_v22  ;;  %v2088_v35 = vsel %vm920_vm14, 1.0, %v2311_v22  ;;  %v2085_v36 = vsel %vm917_vm15, 1.0, %v2311_v22  ;;  %v2086_v37 = vsel %vm918_vm0, 1.0, %v2311_v22 }
 0x185   : > { %1687 = vst [vmem:[%s2484_s27 + $0x670] sm:$0xff] %v2087_v34  ;;  %1688 = vst [vmem:[%s2484_s27 + $0x678] sm:$0xff] %v2088_v35 }
 0x186   : > { %1685 = vst [vmem:[%s2484_s27 + $0x660] sm:$0xff] %v2085_v36  ;;  %1686 = vst [vmem:[%s2484_s27 + $0x668] sm:$0xff] %v2086_v37  ;;  %v621_v38 = vpop.permute.xlu1 %620  ;;  %v617_v39 = vpop.permute.xlu0 %616 }
 0x187   : > { %vm923_vm1 = vcmp.eq.s32.totalorder %v621_v38, %v2470_v18  ;;  %vm924_vm2 = vcmp.eq.s32.totalorder %v621_v38, %v2474_v19  ;;  %vm921_vm3 = vcmp.eq.s32.totalorder %v617_v39, %v2470_v18  ;;  %vm922_vm4 = vcmp.eq.s32.totalorder %v617_v39, %v2474_v19 }
 0x188   : > { %v2091_v40 = vsel %vm923_vm1, 1.0, %v2311_v22  ;;  %v2092_v41 = vsel %vm924_vm2, 1.0, %v2311_v22  ;;  %v2089_v42 = vsel %vm921_vm3, 1.0, %v2311_v22  ;;  %v2090_v43 = vsel %vm922_vm4, 1.0, %v2311_v22 }
 0x189   : > { %1691 = vst [vmem:[%s2484_s27 + $0x690] sm:$0xff] %v2091_v40  ;;  %1692 = vst [vmem:[%s2484_s27 + $0x698] sm:$0xff] %v2092_v41 }
 0x18a   : > { %1689 = vst [vmem:[%s2484_s27 + $0x680] sm:$0xff] %v2089_v42  ;;  %1690 = vst [vmem:[%s2484_s27 + $0x688] sm:$0xff] %v2090_v43  ;;  %v629_v44 = vpop.permute.xlu1 %628  ;;  %v625_v45 = vpop.permute.xlu0 %624 }
 0x18b   : > { %vm927_vm5 = vcmp.eq.s32.totalorder %v629_v44, %v2470_v18  ;;  %vm928_vm6 = vcmp.eq.s32.totalorder %v629_v44, %v2474_v19  ;;  %vm925_vm7 = vcmp.eq.s32.totalorder %v625_v45, %v2470_v18  ;;  %vm926_vm8 = vcmp.eq.s32.totalorder %v625_v45, %v2474_v19 }
 0x18c   : > { %v2095_v46 = vsel %vm927_vm5, 1.0, %v2311_v22  ;;  %v2096_v47 = vsel %vm928_vm6, 1.0, %v2311_v22  ;;  %v2093_v48 = vsel %vm925_vm7, 1.0, %v2311_v22  ;;  %v2094_v49 = vsel %vm926_vm8, 1.0, %v2311_v22 }
 0x18d   : > { %1695 = vst [vmem:[%s2484_s27 + $0x6b0] sm:$0xff] %v2095_v46  ;;  %1696 = vst [vmem:[%s2484_s27 + $0x6b8] sm:$0xff] %v2096_v47 }
 0x18e   : > { %1693 = vst [vmem:[%s2484_s27 + $0x6a0] sm:$0xff] %v2093_v48  ;;  %1694 = vst [vmem:[%s2484_s27 + $0x6a8] sm:$0xff] %v2094_v49  ;;  %v637_v50 = vpop.permute.xlu1 %636  ;;  %v633_v51 = vpop.permute.xlu0 %632 }
 0x18f   : > { %vm931_vm9 = vcmp.eq.s32.totalorder %v637_v50, %v2470_v18  ;;  %vm932_vm10 = vcmp.eq.s32.totalorder %v637_v50, %v2474_v19  ;;  %vm929_vm11 = vcmp.eq.s32.totalorder %v633_v51, %v2470_v18  ;;  %vm930_vm12 = vcmp.eq.s32.totalorder %v633_v51, %v2474_v19 }
 0x190   : > { %v2099_v52 = vsel %vm931_vm9, 1.0, %v2311_v22  ;;  %v2100_v53 = vsel %vm932_vm10, 1.0, %v2311_v22  ;;  %v2097_v54 = vsel %vm929_vm11, 1.0, %v2311_v22  ;;  %v2098_v55 = vsel %vm930_vm12, 1.0, %v2311_v22 }
 0x191   : > { %1699 = vst [vmem:[%s2484_s27 + $0x6d0] sm:$0xff] %v2099_v52  ;;  %1700 = vst [vmem:[%s2484_s27 + $0x6d8] sm:$0xff] %v2100_v53 }
 0x192   : > { %1697 = vst [vmem:[%s2484_s27 + $0x6c0] sm:$0xff] %v2097_v54  ;;  %1698 = vst [vmem:[%s2484_s27 + $0x6c8] sm:$0xff] %v2098_v55  ;;  %v645_v56 = vpop.permute.xlu1 %644  ;;  %v641_v57 = vpop.permute.xlu0 %640 }
 0x193   : > { %vm935_vm13 = vcmp.eq.s32.totalorder %v645_v56, %v2470_v18  ;;  %vm936_vm14 = vcmp.eq.s32.totalorder %v645_v56, %v2474_v19  ;;  %vm933_vm15 = vcmp.eq.s32.totalorder %v641_v57, %v2470_v18  ;;  %vm934_vm0 = vcmp.eq.s32.totalorder %v641_v57, %v2474_v19 }
 0x194   : > { %v2103_v58 = vsel %vm935_vm13, 1.0, %v2311_v22  ;;  %v2104_v59 = vsel %vm936_vm14, 1.0, %v2311_v22  ;;  %v2101_v60 = vsel %vm933_vm15, 1.0, %v2311_v22  ;;  %v2102_v61 = vsel %vm934_vm0, 1.0, %v2311_v22 }
 0x195   : > { %1703 = vst [vmem:[%s2484_s27 + $0x6f0] sm:$0xff] %v2103_v58  ;;  %1704 = vst [vmem:[%s2484_s27 + $0x6f8] sm:$0xff] %v2104_v59 }
 0x196   : > { %1701 = vst [vmem:[%s2484_s27 + $0x6e0] sm:$0xff] %v2101_v60  ;;  %1702 = vst [vmem:[%s2484_s27 + $0x6e8] sm:$0xff] %v2102_v61  ;;  %v656_v62 = vpop.permute.xlu1 %655  ;;  %v652_v63 = vpop.permute.xlu0 %651 }
 0x197   : > { %vm939_vm1 = vcmp.eq.s32.totalorder %v656_v62, %v2470_v18  ;;  %vm940_vm2 = vcmp.eq.s32.totalorder %v656_v62, %v2474_v19  ;;  %vm937_vm3 = vcmp.eq.s32.totalorder %v652_v63, %v2470_v18  ;;  %vm938_vm4 = vcmp.eq.s32.totalorder %v652_v63, %v2474_v19 }
 0x198   : > { %v2107_v0 = vsel %vm939_vm1, 1.0, %v2311_v22  ;;  %v2108_v1 = vsel %vm940_vm2, 1.0, %v2311_v22  ;;  %v2105_v2 = vsel %vm937_vm3, 1.0, %v2311_v22  ;;  %v2106_v3 = vsel %vm938_vm4, 1.0, %v2311_v22 }
 0x199   : > { %1707 = vst [vmem:[%s2484_s27 + $0x710] sm:$0xff] %v2107_v0  ;;  %1708 = vst [vmem:[%s2484_s27 + $0x718] sm:$0xff] %v2108_v1 }
 0x19a   : > { %1705 = vst [vmem:[%s2484_s27 + $0x700] sm:$0xff] %v2105_v2  ;;  %1706 = vst [vmem:[%s2484_s27 + $0x708] sm:$0xff] %v2106_v3  ;;  %v664_v4 = vpop.permute.xlu1 %663  ;;  %v660_v5 = vpop.permute.xlu0 %659 }
 0x19b   : > { %vm943_vm5 = vcmp.eq.s32.totalorder %v664_v4, %v2470_v18  ;;  %vm944_vm6 = vcmp.eq.s32.totalorder %v664_v4, %v2474_v19  ;;  %vm941_vm7 = vcmp.eq.s32.totalorder %v660_v5, %v2470_v18  ;;  %vm942_vm8 = vcmp.eq.s32.totalorder %v660_v5, %v2474_v19 }
 0x19c   : > { %v2111_v6 = vsel %vm943_vm5, 1.0, %v2311_v22  ;;  %v2112_v16 = vsel %vm944_vm6, 1.0, %v2311_v22  ;;  %v2109_v29 = vsel %vm941_vm7, 1.0, %v2311_v22  ;;  %v2110_v7 = vsel %vm942_vm8, 1.0, %v2311_v22 }
 0x19d   : > { %1711 = vst [vmem:[%s2484_s27 + $0x730] sm:$0xff] %v2111_v6  ;;  %1712 = vst [vmem:[%s2484_s27 + $0x738] sm:$0xff] %v2112_v16 }
 0x19e   : > { %1709 = vst [vmem:[%s2484_s27 + $0x720] sm:$0xff] %v2109_v29  ;;  %1710 = vst [vmem:[%s2484_s27 + $0x728] sm:$0xff] %v2110_v7  ;;  %v672_v8 = vpop.permute.xlu1 %671  ;;  %v668_v9 = vpop.permute.xlu0 %667 }
 0x19f   : > { %vm947_vm9 = vcmp.eq.s32.totalorder %v672_v8, %v2470_v18  ;;  %vm948_vm10 = vcmp.eq.s32.totalorder %v672_v8, %v2474_v19  ;;  %vm945_vm11 = vcmp.eq.s32.totalorder %v668_v9, %v2470_v18  ;;  %vm946_vm12 = vcmp.eq.s32.totalorder %v668_v9, %v2474_v19 }
 0x1a0   : > { %v2115_v10 = vsel %vm947_vm9, 1.0, %v2311_v22  ;;  %v2116_v11 = vsel %vm948_vm10, 1.0, %v2311_v22  ;;  %v2113_v13 = vsel %vm945_vm11, 1.0, %v2311_v22  ;;  %v2114_v15 = vsel %vm946_vm12, 1.0, %v2311_v22 }
 0x1a1   : > { %1715 = vst [vmem:[%s2484_s27 + $0x750] sm:$0xff] %v2115_v10  ;;  %1716 = vst [vmem:[%s2484_s27 + $0x758] sm:$0xff] %v2116_v11 }
 0x1a2   : > { %1713 = vst [vmem:[%s2484_s27 + $0x740] sm:$0xff] %v2113_v13  ;;  %1714 = vst [vmem:[%s2484_s27 + $0x748] sm:$0xff] %v2114_v15  ;;  %v680_v17 = vpop.permute.xlu1 %679  ;;  %v676_v20 = vpop.permute.xlu0 %675 }
 0x1a3   : > { %vm951_vm13 = vcmp.eq.s32.totalorder %v680_v17, %v2470_v18  ;;  %vm952_vm14 = vcmp.eq.s32.totalorder %v680_v17, %v2474_v19  ;;  %vm949_vm15 = vcmp.eq.s32.totalorder %v676_v20, %v2470_v18  ;;  %vm950_vm0 = vcmp.eq.s32.totalorder %v676_v20, %v2474_v19 }
 0x1a4   : > { %v2119_v21 = vsel %vm951_vm13, 1.0, %v2311_v22  ;;  %v2120_v12 = vsel %vm952_vm14, 1.0, %v2311_v22  ;;  %v2117_v23 = vsel %vm949_vm15, 1.0, %v2311_v22  ;;  %v2118_v24 = vsel %vm950_vm0, 1.0, %v2311_v22 }
 0x1a5   : > { %1719 = vst [vmem:[%s2484_s27 + $0x770] sm:$0xff] %v2119_v21  ;;  %1720 = vst [vmem:[%s2484_s27 + $0x778] sm:$0xff] %v2120_v12 }
 0x1a6   : > { %1717 = vst [vmem:[%s2484_s27 + $0x760] sm:$0xff] %v2117_v23  ;;  %1718 = vst [vmem:[%s2484_s27 + $0x768] sm:$0xff] %v2118_v24  ;;  %v688_v25 = vpop.permute.xlu1 %687  ;;  %v684_v26 = vpop.permute.xlu0 %683 }
 0x1a7   : > { %vm955_vm1 = vcmp.eq.s32.totalorder %v688_v25, %v2470_v18  ;;  %vm956_vm2 = vcmp.eq.s32.totalorder %v688_v25, %v2474_v19  ;;  %vm953_vm3 = vcmp.eq.s32.totalorder %v684_v26, %v2470_v18  ;;  %vm954_vm4 = vcmp.eq.s32.totalorder %v684_v26, %v2474_v19 }
 0x1a8   : > { %v2123_v27 = vsel %vm955_vm1, 1.0, %v2311_v22  ;;  %v2124_v28 = vsel %vm956_vm2, 1.0, %v2311_v22  ;;  %v2121_v30 = vsel %vm953_vm3, 1.0, %v2311_v22  ;;  %v2122_v31 = vsel %vm954_vm4, 1.0, %v2311_v22 }
 0x1a9   : > { %1723 = vst [vmem:[%s2484_s27 + $0x790] sm:$0xff] %v2123_v27  ;;  %1724 = vst [vmem:[%s2484_s27 + $0x798] sm:$0xff] %v2124_v28 }
 0x1aa   : > { %1721 = vst [vmem:[%s2484_s27 + $0x780] sm:$0xff] %v2121_v30  ;;  %1722 = vst [vmem:[%s2484_s27 + $0x788] sm:$0xff] %v2122_v31  ;;  %v696_v32 = vpop.permute.xlu1 %695  ;;  %v692_v14 = vpop.permute.xlu0 %691 }
 0x1ab   : > { %vm959_vm5 = vcmp.eq.s32.totalorder %v696_v32, %v2470_v18  ;;  %vm960_vm6 = vcmp.eq.s32.totalorder %v696_v32, %v2474_v19  ;;  %vm957_vm7 = vcmp.eq.s32.totalorder %v692_v14, %v2470_v18  ;;  %vm958_vm8 = vcmp.eq.s32.totalorder %v692_v14, %v2474_v19 }
 0x1ac   : > { %v2127_v33 = vsel %vm959_vm5, 1.0, %v2311_v22  ;;  %v2128_v34 = vsel %vm960_vm6, 1.0, %v2311_v22  ;;  %v2125_v35 = vsel %vm957_vm7, 1.0, %v2311_v22  ;;  %v2126_v36 = vsel %vm958_vm8, 1.0, %v2311_v22 }
 0x1ad   : > { %1727 = vst [vmem:[%s2484_s27 + $0x7b0] sm:$0xff] %v2127_v33  ;;  %1728 = vst [vmem:[%s2484_s27 + $0x7b8] sm:$0xff] %v2128_v34 }
 0x1ae   : > { %1725 = vst [vmem:[%s2484_s27 + $0x7a0] sm:$0xff] %v2125_v35  ;;  %1726 = vst [vmem:[%s2484_s27 + $0x7a8] sm:$0xff] %v2126_v36  ;;  %v704_v37 = vpop.permute.xlu1 %703  ;;  %v700_v38 = vpop.permute.xlu0 %699 }
 0x1af   : > { %vm963_vm9 = vcmp.eq.s32.totalorder %v704_v37, %v2470_v18  ;;  %vm964_vm10 = vcmp.eq.s32.totalorder %v704_v37, %v2474_v19  ;;  %vm961_vm11 = vcmp.eq.s32.totalorder %v700_v38, %v2470_v18  ;;  %vm962_vm12 = vcmp.eq.s32.totalorder %v700_v38, %v2474_v19 }
 0x1b0   : > { %v2131_v39 = vsel %vm963_vm9, 1.0, %v2311_v22  ;;  %v2132_v40 = vsel %vm964_vm10, 1.0, %v2311_v22  ;;  %v2129_v41 = vsel %vm961_vm11, 1.0, %v2311_v22  ;;  %v2130_v42 = vsel %vm962_vm12, 1.0, %v2311_v22 }
 0x1b1   : > { %1731 = vst [vmem:[%s2484_s27 + $0x7d0] sm:$0xff] %v2131_v39  ;;  %1732 = vst [vmem:[%s2484_s27 + $0x7d8] sm:$0xff] %v2132_v40 }
 0x1b2   : > { %1729 = vst [vmem:[%s2484_s27 + $0x7c0] sm:$0xff] %v2129_v41  ;;  %1730 = vst [vmem:[%s2484_s27 + $0x7c8] sm:$0xff] %v2130_v42  ;;  %v712_v43 = vpop.permute.xlu1 %711  ;;  %v708_v44 = vpop.permute.xlu0 %707 }
 0x1b3   : > { %vm967_vm13 = vcmp.eq.s32.totalorder %v712_v43, %v2470_v18  ;;  %vm968_vm14 = vcmp.eq.s32.totalorder %v712_v43, %v2474_v19  ;;  %vm965_vm15 = vcmp.eq.s32.totalorder %v708_v44, %v2470_v18  ;;  %vm966_vm0 = vcmp.eq.s32.totalorder %v708_v44, %v2474_v19 }
 0x1b4   : > { %v2135_v45 = vsel %vm967_vm13, 1.0, %v2311_v22  ;;  %v2136_v46 = vsel %vm968_vm14, 1.0, %v2311_v22  ;;  %v2133_v47 = vsel %vm965_vm15, 1.0, %v2311_v22  ;;  %v2134_v48 = vsel %vm966_vm0, 1.0, %v2311_v22 }
 0x1b5   : > { %1735 = vst [vmem:[%s2484_s27 + $0x7f0] sm:$0xff] %v2135_v45  ;;  %1736 = vst [vmem:[%s2484_s27 + $0x7f8] sm:$0xff] %v2136_v46 }
 0x1b6   : > { %1733 = vst [vmem:[%s2484_s27 + $0x7e0] sm:$0xff] %v2133_v47  ;;  %1734 = vst [vmem:[%s2484_s27 + $0x7e8] sm:$0xff] %v2134_v48 }
 0x1b7   : > { %s2145_s30 = sshll.u32 %s2299_s9, 14  ;;  %s1771_s2 = sshll.u32 %s2484_s27, 4  ;;  %s1772_s2 = int_to_ptr.vmem [resolvable:$true] %s1771_s2 }
 0x1b8   : > { %s1754_s5 = scalar_lea.hbm %s3373_s1, %s2145_s30  ;;  %s2312_s12 = smov 16384  }
 0x1b9   : > { %p3382_p8 = scmp.ne.s32.totalorder %s3377_s19, 0  ;;  %s2313_s13 = smov 32768  }
 0x1ba   : > { %s2314_s15 = smov 64   ;;  %s2315_s16 = smov 256  }
 0x1bb   : > { %2148 = sst [smem:[#allocation7]] (%p3382_p8), %s2312_s12  ;;  %s2316_s9 = smov 16  }
 0x1bc   : > { %2149 = sst [smem:[#allocation7 + $0x1]] (%p3382_p8), %s2313_s13  ;;  %s2317_s17 = smov [#allocation6]  }
 0x1bd   : > { %2150 = sst [smem:[#allocation7 + $0x2]] (%p3382_p8), %s2314_s15  ;;  %s2318_s22 = smov 0  }
 0x1be   : > { %2151 = sst [smem:[#allocation7 + $0x3]] (%p3382_p8), %s2315_s16 }
 0x1bf   : > { %2152 = sst [smem:[#allocation7 + $0x4]] (%p3382_p8), %s2315_s16 }
 0x1c0   : > { %2153 = sst [smem:[#allocation7 + $0x5]] (%p3382_p8), %s2316_s9 }
 0x1c1   : > { %2154 = dma.general (%p3382_p8), %s1772_s2, 32768, %s1754_s5, %s1738_s29, %s2317_s17, [#allocation7], %s2318_s22, 0  }
 0x1c2 PF: > { %s1799_s23 = sand.u32 1, %s2287_s6   ;;  %p3383_p9 = scmp.ne.s32.totalorder %s3378_s21, 0 }
 0x1c3   : > { %p3384_p11 = scmp.ge.s32.totalorder %s2307_s11, 2  ;;  %s1800_s24 = scalar_lea.sflag [#allocation4], %s1799_s23 }
 0x1c5   : > { %p2161_p0 = pnand %p3384_p11, %p3383_p9 }
 0x1c7   : > { %2282 = dma.done.wait (!%p2161_p0), %s1800_s24, 32768  }
 0x1c8   : > { %2284 = vsyncadd (!%p2161_p0), %s1800_s24, 4294934528  ;;  %s17_s11 = sadd.s32 1, %s2307_s11   ;;  %s3385_s6 = smov %s2291_s7 }
 0x1c9   : > { %p14_p7 = scmp.ge.s32.totalorder %s17_s11, 4   ;;  %s3386_s7 = smov %s2295_s8 }
 0x1ca   : > { %s3387_s8 = smov %s2385_s20  ;;  %s3388_s9 = smov %s2303_s10 }
 0x1cb   : > { %s3389_s10 = smov %s3391_s14  ;;  %16 = sbr.rel (!%p14_p7) target bundleno = 6 (0x6), region = 74 }
 0x1d2   :  { %1805 = vsyncpa [#allocation3], 1 }
 0x1d3   :  { %1807 = vsyncpa [#allocation3 + $0x1], 1 }
 0x1d4   :  { %1808 = vsyncpa [#allocation4], 1 }
 0x1d5   :  { %1810 = vsyncpa [#allocation4 + $0x1], 1 }

</bundles_post_ra>
